<compile_context>
chip_gen: v7x
topology: tpu7x:2x2x1
jax: 0.10.0
libtpu: 0.0.40
codegen_flags: <defaults>
</compile_context>

<pallas_src>
import math
import functools

import jax
import jax.numpy as jnp
from jax import lax
from jax.experimental import pallas as pl
from jax.experimental.pallas import tpu as pltpu

INF = 10000000000.0  # matches the PyTorch module


# ---------------------------------- Pallas kernel ---------------------------------------

def decoder_layer_kernel(x_ref, enc_ref,
                         wqkv1, wo1, g1, b1,
                         wq2, wkv2, wo2, g2, b2,
                         w1, bf1, w2, bf2, g3, b3,
                         out_ref, att_scratch, *, n_heads):
    Bb, T, D = x_ref.shape
    S = enc_ref.shape[1]
    H = n_heads
    dh = D // H
    # Attention is built with d_key = d_model, so scale = sqrt(d_model) (not head dim).
    inv_scale = 1.0 / math.sqrt(D)

    f32 = jnp.float32
    bf16 = jnp.bfloat16

    def mdot(a_bf, b_bf):
        # plain 2-D matmul, bf16 MXU inputs, f32 accumulation
        return jnp.dot(a_bf, b_bf, preferred_element_type=f32)

    def layernorm(v, gamma, beta, eps=1e-6):
        # torch.std default is unbiased (n-1); module adds eps to std (not var).
        mean = jnp.mean(v, axis=-1, keepdims=True)
        diff = v - mean
        var = jnp.sum(diff * diff, axis=-1, keepdims=True) * (1.0 / (D - 1))
        inv = pl.reciprocal(jnp.sqrt(var) + eps)          # EUP reciprocal, no vdiv
        return gamma * (diff * inv) + beta

    def attention(q_slab, k_slab, v_slab, wo_ref, Lq, Lk, causal):
        # q_slab: (Bb*Lq, D) f32   k_slab/v_slab: (Bb*Lk, D) f32
        # Fold 1/sqrt(d_model) into Q once (cheap O(T*D) instead of O(H*T*S)).
        q_bf = (q_slab * inv_scale).astype(bf16)
        k_bf = k_slab.astype(bf16)
        v_bf = v_slab.astype(bf16)
        if causal:
            # Mask built ONCE per attention call, pre-scaled so it matches the module's
            # (scores - INF*mask) / scale ordering exactly.
            row = lax.broadcasted_iota(jnp.int32, (Lq, Lk), 0)
            col = lax.broadcasted_iota(jnp.int32, (Lq, Lk), 1)
            neg = jnp.where(col > row, INF * inv_scale, 0.0).astype(f32)
        # Per-head score / PV matmuls on lane-sliced views; results land in a VMEM
        # scratch slab at their head's lane offset == torch.cat(heads, dim=-1) layout.
        for h in range(H):
            sl = slice(h * dh, (h + 1) * dh)
            qh = q_bf[:, sl].reshape(Bb, Lq, dh)
            kh = k_bf[:, sl].reshape(Bb, Lk, dh)
            vh = v_bf[:, sl].reshape(Bb, Lk, dh)
            s = jnp.einsum('bqd,bkd->bqk', qh, kh, preferred_element_type=f32)
            if causal:
                s = s - neg[None]
            m = jnp.max(s, axis=-1, keepdims=True)
            e = jnp.exp(s - m)
            p = e * pl.reciprocal(jnp.sum(e, axis=-1, keepdims=True), approx=True)
            oh = jnp.einsum('bqk,bkd->bqd', p.astype(bf16), vh,
                            preferred_element_type=f32)
            att_scratch[:, sl] = oh.reshape(Bb * Lq, dh)
        # Single full-K output projection on the concatenated-head slab.
        return mdot(att_scratch[...].astype(bf16), wo_ref[...])

    x = x_ref[...]                                        # (Bb, T, D) f32
    enc = enc_ref[...]                                    # (Bb, S, D) f32
    x2 = x.reshape(Bb * T, D)                             # flattened rows for LN/FFN/residuals
    enc2 = enc.reshape(Bb * S, D)
    x_bf = x2.astype(bf16)                                # cast each slab to bf16 ONCE
    enc_bf = enc2.astype(bf16)

    # --- self-attention residual block (causal) ---
    qkv = mdot(x_bf, wqkv1[...])                          # (Bb*T, 3D) f32, one MXU-wide matmul
    sa = attention(qkv[:, :D], qkv[:, D:2 * D], qkv[:, 2 * D:], wo1, T, T, causal=True)
    y2 = layernorm(x2 + sa, g1[...], b1[...])             # (Bb*T, D) f32
    y_bf = y2.astype(bf16)

    # --- cross-attention residual block ---
    q2 = mdot(y_bf, wq2[...])                             # (Bb*T, D)
    kv2 = mdot(enc_bf, wkv2[...])                         # (Bb*S, 2D), fused K|V projection
    ca = attention(q2, kv2[:, :D], kv2[:, D:], wo2, T, S, causal=False)
    z2 = layernorm(y2 + ca, g2[...], b2[...])
    z_bf = z2.astype(bf16)

    # --- feed-forward residual block (big 2-D matmuls on (Bb*T, D)) ---
    hdn = jnp.maximum(mdot(z_bf, w1[...]) + bf1[...], 0.0)
    f = mdot(hdn.astype(bf16), w2[...]) + bf2[...]
    out2 = layernorm(z2 + f, g3[...], b3[...])

    out_ref[...] = out2.reshape(Bb, T, D)
    # TODO(synk): dropout layers are identity here (inference semantics); no RNG dropout.
    # TODO(synk): for production T/S, add a KV-tile grid axis with online-softmax
    # accumulators (flash-style) so the (T,S) score tile never exceeds v7x's 64 MiB VMEM,
    # and grid over query blocks so B=1 still fills both v7x TensorCores.


# ---------------------------------- wrapper helpers --------------------------------------

def _pick_vmem_limit():
    """Per-generation scoped-VMEM budget (bytes): ~3/4 of physical VMEM, capped at 96 MiB.
    v7x (64 MiB/TC) -> 48 MiB; v5e/v6e (128 MiB) -> 96 MiB."""
    phys = 128 * 1024 * 1024
    try:
        phys = pltpu.get_tpu_info().vmem_capacity_bytes
    except Exception:
        pass
    return int(min(phys * 3 // 4, 96 * 1024 * 1024))


def _pick_batch_block(B, T, S, D, d_hidden, vmem_limit):
    """Largest divisor of B whose per-step working set fits the VMEM budget while keeping
    >= 2 grid steps (both v7x TensorCores busy) whenever B >= 2."""
    # bf16 weights, double-buffered by the default pipeline.
    w_bytes = 2 * 2 * (3 * D * D + D * D + D * D + 2 * D * D + D * D
                       + D * d_hidden + d_hidden * D)
    budget = max(vmem_limit - w_bytes - (4 << 20), 1 << 20)

    def block_bytes(bb):
        act = 4 * bb * (3 * T * D + 2 * S * D + 4 * T * D)   # qkv/kv/att/residual slabs
        ffn = 4 * bb * T * d_hidden
        scores = 4 * bb * T * max(T, S) * 2                  # one head's scores + probs live
        io = 2 * 4 * bb * (T + S + T) * D                    # double-buffered in/out blocks
        return act + ffn + scores + io

    best = 1
    for bb in range(1, B + 1):
        if B % bb:
            continue
        if B >= 2 and B // bb < 2:
            continue
        if block_bytes(bb) <= budget:
            best = max(best, bb)
    return best


# ---------------------------------- wrapper ----------------------------------------------

def decoder_layer(x, encoding, params, n_heads, batch_block=None):
    B, T, D = x.shape
    S = encoding.shape[1]
    assert D % n_heads == 0, "d_model must be divisible by n_heads"
    d_hidden = params["w1"].shape[1]

    bf16 = jnp.bfloat16
    # Fuse + pre-cast matmul weights to bf16 once, OUTSIDE the kernel (negligible XLA work):
    #   self-attn  : wqkv1 = [wq1 | wk1 | wv1]  (D, 3D)
    #   cross-attn : wkv2  = [wk2 | wv2]        (D, 2D)
    wqkv1 = jnp.concatenate([params["wq1"], params["wk1"], params["wv1"]], axis=1).astype(bf16)
    wkv2 = jnp.concatenate([params["wk2"], params["wv2"]], axis=1).astype(bf16)
    weights = [
        wqkv1, params["wo1"].astype(bf16), params["g1"], params["b1"],
        params["wq2"].astype(bf16), wkv2, params["wo2"].astype(bf16),
        params["g2"], params["b2"],
        params["w1"].astype(bf16), params["bf1"],
        params["w2"].astype(bf16), params["bf2"],
        params["g3"], params["b3"],
    ]

    vmem_limit = _pick_vmem_limit()
    if batch_block is None:
        batch_block = _pick_batch_block(B, T, S, D, d_hidden, vmem_limit)
    assert B % batch_block == 0
    grid = (B // batch_block,)

    in_specs = [
        pl.BlockSpec((batch_block, T, D), lambda b: (b, 0, 0)),
        pl.BlockSpec((batch_block, S, D), lambda b: (b, 0, 0)),
    ]
    for w in weights:
        in_specs.append(pl.BlockSpec(w.shape, lambda b, nd=w.ndim: (0,) * nd))
    # TODO(synk): grid-invariant weights are still double-buffered by the default pipeline;
    # for very large d_model/d_hidden move them to memory_space=pl.ANY with a one-time
    # make_async_copy into persistent VMEM scratch to reclaim that headroom on v7x.

    kernel = functools.partial(decoder_layer_kernel, n_heads=n_heads)

    return pl.pallas_call(
        kernel,
        out_shape=jax.ShapeDtypeStruct((B, T, D), jnp.float32),
        grid_spec=pltpu.PrefetchScalarGridSpec(
            num_scalar_prefetch=0,
            grid=grid,
            in_specs=in_specs,
            out_specs=pl.BlockSpec((batch_block, T, D), lambda b: (b, 0, 0)),
            scratch_shapes=[pltpu.VMEM((batch_block * T, D), jnp.float32)],
        ),
        compiler_params=pltpu.CompilerParams(
            dimension_semantics=("parallel",),
            vmem_limit_bytes=vmem_limit,
        ),
    )(x, encoding, *weights)


# ---------------------------------- parameter init --------------------------------------

def init_params(key, d_model, d_hidden):
    keys = jax.random.split(key, 16)
    k = iter(keys)

    def w(shape, kk):
        return 0.1 * jax.random.normal(kk, shape, dtype=jnp.float32)

    p = {}
    # self-attention MultiHead (all (in, out), no bias)
    p["wq1"] = w((d_model, d_model), next(k))
    p["wk1"] = w((d_model, d_model), next(k))
    p["wv1"] = w((d_model, d_model), next(k))
    p["wo1"] = w((d_model, d_model), next(k))
    p["g1"] = jnp.ones((1, d_model), jnp.float32)
    p["b1"] = jnp.zeros((1, d_model), jnp.float32)
    # cross-attention MultiHead
    p["wq2"] = w((d_model, d_model), next(k))
    p["wk2"] = w((d_model, d_model), next(k))
    p["wv2"] = w((d_model, d_model), next(k))
    p["wo2"] = w((d_model, d_model), next(k))
    p["g2"] = jnp.ones((1, d_model), jnp.float32)
    p["b2"] = jnp.zeros((1, d_model), jnp.float32)
    # feed-forward
    p["w1"] = w((d_model, d_hidden), next(k))
    p["bf1"] = w((1, d_hidden), next(k))
    p["w2"] = w((d_hidden, d_model), next(k))
    p["bf2"] = w((1, d_model), next(k))
    p["g3"] = jnp.ones((1, d_model), jnp.float32)
    p["b3"] = jnp.zeros((1, d_model), jnp.float32)
    return p


# ---------------------------------- pure-JAX reference -----------------------------------

def reference_forward(x, encoding, params, n_heads):
    """Op-for-op mirror of the PyTorch DecoderLayer, using the same mixed-precision policy
    as the kernel (bf16 matmul inputs, f32 accumulation, f32 softmax/LayerNorm), but with
    exact divisions (no hardware approximations).  Attention scale is sqrt(d_model) and
    LayerNorm uses unbiased std + eps-on-std, exactly as in the PyTorch module."""
    d_model = x.shape[-1]
    scale = math.sqrt(d_model)

    def dot(a, b):
        return jnp.dot(a.astype(jnp.bfloat16), b.astype(jnp.bfloat16),
                       preferred_element_type=jnp.float32)

    def layernorm(v, g, b, eps=1e-6):
        d = v.shape[-1]
        mean = jnp.mean(v, -1, keepdims=True)
        var = jnp.sum((v - mean) ** 2, -1, keepdims=True) / (d - 1)
        return g * (v - mean) / (jnp.sqrt(var) + eps) + b

    def mha(q_in, k_in, v_in, wq, wk, wv, wo, causal):
        q, k, v = dot(q_in, wq), dot(k_in, wk), dot(v_in, wv)
        T, S = q.shape[0], k.shape[0]
        dh = d_model // n_heads
        outs = []
        for h in range(n_heads):
            qh = q[:, h * dh:(h + 1) * dh]
            kh = k[:, h * dh:(h + 1) * dh]
            vh = v[:, h * dh:(h + 1) * dh]
            s = dot(qh, kh.T)
            if causal:
                row = lax.broadcasted_iota(jnp.int32, (T, S), 0)
                col = lax.broadcasted_iota(jnp.int32, (T, S), 1)
                s = s - jnp.where(col > row, INF, 0.0)
            p = jax.nn.softmax(s / scale, axis=-1)
            outs.append(dot(p, vh))
        return dot(jnp.concatenate(outs, axis=-1), wo)

    def one(xb, eb):
        sa = mha(xb, xb, xb, params["wq1"], params["wk1"], params["wv1"],
                 params["wo1"], True)
        y = layernorm(xb + sa, params["g1"], params["b1"])
        ca = mha(y, eb, eb, params["wq2"], params["wk2"], params["wv2"],
                 params["wo2"], False)
        z = layernorm(y + ca, params["g2"], params["b2"])
        hdn = jnp.maximum(dot(z, params["w1"]) + params["bf1"], 0.0)
        f = dot(hdn, params["w2"]) + params["bf2"]
        return layernorm(z + f, params["g3"], params["b3"])

    return jax.vmap(one)(x, encoding)


# -------------------------------------- main ---------------------------------------------

if __name__ == "__main__":
    B, T, S = 2, 8, 8          # batch, decoder seq, encoder seq
    d_model, d_hidden, n_heads = 32, 64, 4

    key = jax.random.PRNGKey(0)
    kx, kenc, kp = jax.random.split(key, 3)
    x = jax.random.normal(kx, (B, T, d_model), dtype=jnp.float32)
    encoding = jax.random.normal(kenc, (B, S, d_model), dtype=jnp.float32)
    params = init_params(kp, d_model, d_hidden)

    out = jax.block_until_ready(decoder_layer(x, encoding, params, n_heads))
    ref = jax.block_until_ready(reference_forward(x, encoding, params, n_heads))

    assert out.shape == (B, T, d_model)
    # Kernel uses bf16 MXU inputs, EUP approximate reciprocal in the softmax, and folds the
    # 1/sqrt(d_model) scale into Q; the reference mirrors the bf16 matmul policy but uses
    # exact divides -> tolerance 5e-3.
    assert jnp.allclose(out, ref, atol=5e-3, rtol=5e-3), "mismatch vs pure-JAX reference"

    print("KERNEL_OK")
</pallas_src>

<mosaic_0001>
module attributes {stable_mosaic.version = 11 : i64} {
  func.func @decoder_layer_kernel(%arg0: i32, %arg1: memref<1x8x32xf32, #tpu.memory_space<vmem>>, %arg2: memref<1x8x32xf32, #tpu.memory_space<vmem>>, %arg3: memref<32x96xbf16, #tpu.memory_space<vmem>>, %arg4: memref<32x32xbf16, #tpu.memory_space<vmem>>, %arg5: memref<1x32xf32, #tpu.memory_space<vmem>>, %arg6: memref<1x32xf32, #tpu.memory_space<vmem>>, %arg7: memref<32x32xbf16, #tpu.memory_space<vmem>>, %arg8: memref<32x64xbf16, #tpu.memory_space<vmem>>, %arg9: memref<32x32xbf16, #tpu.memory_space<vmem>>, %arg10: memref<1x32xf32, #tpu.memory_space<vmem>>, %arg11: memref<1x32xf32, #tpu.memory_space<vmem>>, %arg12: memref<32x64xbf16, #tpu.memory_space<vmem>>, %arg13: memref<1x64xf32, #tpu.memory_space<vmem>>, %arg14: memref<64x32xbf16, #tpu.memory_space<vmem>>, %arg15: memref<1x32xf32, #tpu.memory_space<vmem>>, %arg16: memref<1x32xf32, #tpu.memory_space<vmem>>, %arg17: memref<1x32xf32, #tpu.memory_space<vmem>>, %arg18: memref<1x8x32xf32, #tpu.memory_space<vmem>>, %arg19: memref<8x32xf32, #tpu.memory_space<vmem>>) attributes {dimension_semantics = [#tpu.dimension_semantics<parallel>], iteration_bounds = array<i64: 2>, scalar_prefetch = 0 : i64, scratch_operands = 1 : i64, tpu.core_type = #tpu.core_type<tc>, window_params = [{transform_indices = @transform_0, window_bounds = array<i64: 1, 8, 32>}, {transform_indices = @transform_1, window_bounds = array<i64: 1, 8, 32>}, {pipeline_mode = #tpu.pipeline_mode<synchronous>, transform_indices = @transform_2, window_bounds = array<i64: 32, 96>}, {pipeline_mode = #tpu.pipeline_mode<synchronous>, transform_indices = @transform_3, window_bounds = array<i64: 32, 32>}, {pipeline_mode = #tpu.pipeline_mode<synchronous>, transform_indices = @transform_4, window_bounds = array<i64: 1, 32>}, {pipeline_mode = #tpu.pipeline_mode<synchronous>, transform_indices = @transform_5, window_bounds = array<i64: 1, 32>}, {pipeline_mode = #tpu.pipeline_mode<synchronous>, transform_indices = @transform_6, window_bounds = array<i64: 32, 32>}, {pipeline_mode = #tpu.pipeline_mode<synchronous>, transform_indices = @transform_7, window_bounds = array<i64: 32, 64>}, {pipeline_mode = #tpu.pipeline_mode<synchronous>, transform_indices = @transform_8, window_bounds = array<i64: 32, 32>}, {pipeline_mode = #tpu.pipeline_mode<synchronous>, transform_indices = @transform_9, window_bounds = array<i64: 1, 32>}, {pipeline_mode = #tpu.pipeline_mode<synchronous>, transform_indices = @transform_10, window_bounds = array<i64: 1, 32>}, {pipeline_mode = #tpu.pipeline_mode<synchronous>, transform_indices = @transform_11, window_bounds = array<i64: 32, 64>}, {pipeline_mode = #tpu.pipeline_mode<synchronous>, transform_indices = @transform_12, window_bounds = array<i64: 1, 64>}, {pipeline_mode = #tpu.pipeline_mode<synchronous>, transform_indices = @transform_13, window_bounds = array<i64: 64, 32>}, {pipeline_mode = #tpu.pipeline_mode<synchronous>, transform_indices = @transform_14, window_bounds = array<i64: 1, 32>}, {pipeline_mode = #tpu.pipeline_mode<synchronous>, transform_indices = @transform_15, window_bounds = array<i64: 1, 32>}, {pipeline_mode = #tpu.pipeline_mode<synchronous>, transform_indices = @transform_16, window_bounds = array<i64: 1, 32>}, {transform_indices = @transform_17, window_bounds = array<i64: 1, 8, 32>}]} {
    %c0 = arith.constant 0 : index
    %c0_0 = arith.constant 0 : index
    %c0_1 = arith.constant 0 : index
    %0 = vector.load %arg1[%c0, %c0_0, %c0_1] : memref<1x8x32xf32, #tpu.memory_space<vmem>>, vector<1x8x32xf32>
    %c0_2 = arith.constant 0 : index
    %c0_3 = arith.constant 0 : index
    %c0_4 = arith.constant 0 : index
    %1 = vector.load %arg2[%c0_2, %c0_3, %c0_4] : memref<1x8x32xf32, #tpu.memory_space<vmem>>, vector<1x8x32xf32>
    %2 = vector.shape_cast %0 : vector<1x8x32xf32> to vector<8x32xf32>
    %3 = vector.shape_cast %1 : vector<1x8x32xf32> to vector<8x32xf32>
    %4 = arith.truncf %2 : vector<8x32xf32> to vector<8x32xbf16>
    %5 = arith.truncf %3 : vector<8x32xf32> to vector<8x32xbf16>
    %c0_5 = arith.constant 0 : index
    %c0_6 = arith.constant 0 : index
    %6 = vector.load %arg3[%c0_5, %c0_6] : memref<32x96xbf16, #tpu.memory_space<vmem>>, vector<32x96xbf16>
    %cst = arith.constant dense<0.000000e+00> : vector<8x96xf32>
    %7 = tpu.matmul %4, %6, %cst {dimension_numbers = #tpu.dot_dimension_numbers<[1], [0], [0], [1], [0, 0, 1, 1], [], []>} : vector<8x32xbf16>, vector<32x96xbf16>, vector<8x96xf32> -> vector<8x96xf32>
    %8 = vector.extract_strided_slice %7 {offsets = [0, 0], sizes = [8, 32], strides = [1, 1]} : vector<8x96xf32> to vector<8x32xf32>
    %9 = vector.extract_strided_slice %7 {offsets = [0, 32], sizes = [8, 32], strides = [1, 1]} : vector<8x96xf32> to vector<8x32xf32>
    %10 = vector.extract_strided_slice %7 {offsets = [0, 64], sizes = [8, 32], strides = [1, 1]} : vector<8x96xf32> to vector<8x32xf32>
    %cst_7 = arith.constant 0.176776692 : f32
    %11 = vector.broadcast %cst_7 : f32 to vector<8x32xf32>
    %12 = arith.mulf %8, %11 : vector<8x32xf32>
    %13 = arith.truncf %12 : vector<8x32xf32> to vector<8x32xbf16>
    %14 = arith.truncf %9 : vector<8x32xf32> to vector<8x32xbf16>
    %15 = arith.truncf %10 : vector<8x32xf32> to vector<8x32xbf16>
    %16 = tpu.iota {dimensions = array<i32: 0>} : vector<8x8xi32>
    %17 = tpu.iota {dimensions = array<i32: 1>} : vector<8x8xi32>
    %18 = arith.cmpi sgt, %17, %16 : vector<8x8xi32>
    %cst_8 = arith.constant 1.76776691E+9 : f32
    %cst_9 = arith.constant 0.000000e+00 : f32
    %19 = vector.broadcast %cst_8 : f32 to vector<8x8xf32>
    %20 = vector.broadcast %cst_9 : f32 to vector<8x8xf32>
    %21 = arith.select %18, %19, %20 : vector<8x8xi1>, vector<8x8xf32>
    %22 = vector.extract_strided_slice %13 {offsets = [0, 0], sizes = [8, 8], strides = [1, 1]} : vector<8x32xbf16> to vector<8x8xbf16>
    %23 = vector.shape_cast %22 : vector<8x8xbf16> to vector<1x8x8xbf16>
    %24 = vector.extract_strided_slice %14 {offsets = [0, 0], sizes = [8, 8], strides = [1, 1]} : vector<8x32xbf16> to vector<8x8xbf16>
    %25 = vector.shape_cast %24 : vector<8x8xbf16> to vector<1x8x8xbf16>
    %26 = vector.extract_strided_slice %15 {offsets = [0, 0], sizes = [8, 8], strides = [1, 1]} : vector<8x32xbf16> to vector<8x8xbf16>
    %27 = vector.shape_cast %26 : vector<8x8xbf16> to vector<1x8x8xbf16>
    "tpu.trace_start"() <{level = 10 : i32, message = "bqd,bkd->bqk"}> : () -> ()
    %cst_10 = arith.constant dense<0.000000e+00> : vector<1x8x8xf32>
    %28 = tpu.matmul %23, %25, %cst_10 {dimension_numbers = #tpu.dot_dimension_numbers<[2], [2], [1], [1], [0, 0, 0, 1, 1, 1], [0], [0]>} : vector<1x8x8xbf16>, vector<1x8x8xbf16>, vector<1x8x8xf32> -> vector<1x8x8xf32>
    "tpu.trace_stop"() : () -> ()
    %29 = vector.shape_cast %21 : vector<8x8xf32> to vector<1x8x8xf32>
    %30 = arith.subf %28, %29 : vector<1x8x8xf32>
    %cst_11 = arith.constant dense<0xFF800000> : vector<1x8xf32>
    %31 = vector.multi_reduction <maximumf>, %30, %cst_11 [2] : vector<1x8x8xf32> to vector<1x8xf32>
    %32 = vector.shape_cast %31 : vector<1x8xf32> to vector<1x8x1xf32>
    %33 = vector.broadcast %32 : vector<1x8x1xf32> to vector<1x8x8xf32>
    %34 = arith.subf %30, %33 : vector<1x8x8xf32>
    %35 = math.exp %34 : vector<1x8x8xf32>
    %cst_12 = arith.constant dense<0.000000e+00> : vector<1x8xf32>
    %36 = vector.multi_reduction <add>, %35, %cst_12 [2] : vector<1x8x8xf32> to vector<1x8xf32>
    %37 = vector.shape_cast %36 : vector<1x8xf32> to vector<1x8x1xf32>
    %38 = tpu.reciprocal %37 {approx = true} : vector<1x8x1xf32> -> vector<1x8x1xf32>
    %39 = vector.broadcast %38 : vector<1x8x1xf32> to vector<1x8x8xf32>
    %40 = arith.mulf %35, %39 : vector<1x8x8xf32>
    %41 = arith.truncf %40 : vector<1x8x8xf32> to vector<1x8x8xbf16>
    "tpu.trace_start"() <{level = 10 : i32, message = "bqk,bkd->bqd"}> : () -> ()
    %cst_13 = arith.constant dense<0.000000e+00> : vector<1x8x8xf32>
    %42 = tpu.matmul %41, %27, %cst_13 {dimension_numbers = #tpu.dot_dimension_numbers<[2], [1], [1], [2], [0, 0, 0, 1, 1, 2], [0], [0]>} : vector<1x8x8xbf16>, vector<1x8x8xbf16>, vector<1x8x8xf32> -> vector<1x8x8xf32>
    "tpu.trace_stop"() : () -> ()
    %43 = vector.shape_cast %42 : vector<1x8x8xf32> to vector<8x8xf32>
    %c0_14 = arith.constant 0 : index
    %c0_15 = arith.constant 0 : index
    %44 = vector.load %arg19[%c0_14, %c0_15] : memref<8x32xf32, #tpu.memory_space<vmem>>, vector<8x8xf32>
    tpu.vector_store %arg19[%c0_14, %c0_15], %43 {strides = array<i32>} : memref<8x32xf32, #tpu.memory_space<vmem>>, vector<8x8xf32>,
    %45 = vector.extract_strided_slice %13 {offsets = [0, 8], sizes = [8, 8], strides = [1, 1]} : vector<8x32xbf16> to vector<8x8xbf16>
    %46 = vector.shape_cast %45 : vector<8x8xbf16> to vector<1x8x8xbf16>
    %47 = vector.extract_strided_slice %14 {offsets = [0, 8], sizes = [8, 8], strides = [1, 1]} : vector<8x32xbf16> to vector<8x8xbf16>
    %48 = vector.shape_cast %47 : vector<8x8xbf16> to vector<1x8x8xbf16>
    %49 = vector.extract_strided_slice %15 {offsets = [0, 8], sizes = [8, 8], strides = [1, 1]} : vector<8x32xbf16> to vector<8x8xbf16>
    %50 = vector.shape_cast %49 : vector<8x8xbf16> to vector<1x8x8xbf16>
    "tpu.trace_start"() <{level = 10 : i32, message = "bqd,bkd->bqk"}> : () -> ()
    %cst_16 = arith.constant dense<0.000000e+00> : vector<1x8x8xf32>
    %51 = tpu.matmul %46, %48, %cst_16 {dimension_numbers = #tpu.dot_dimension_numbers<[2], [2], [1], [1], [0, 0, 0, 1, 1, 1], [0], [0]>} : vector<1x8x8xbf16>, vector<1x8x8xbf16>, vector<1x8x8xf32> -> vector<1x8x8xf32>
    "tpu.trace_stop"() : () -> ()
    %52 = vector.shape_cast %21 : vector<8x8xf32> to vector<1x8x8xf32>
    %53 = arith.subf %51, %52 : vector<1x8x8xf32>
    %cst_17 = arith.constant dense<0xFF800000> : vector<1x8xf32>
    %54 = vector.multi_reduction <maximumf>, %53, %cst_17 [2] : vector<1x8x8xf32> to vector<1x8xf32>
    %55 = vector.shape_cast %54 : vector<1x8xf32> to vector<1x8x1xf32>
    %56 = vector.broadcast %55 : vector<1x8x1xf32> to vector<1x8x8xf32>
    %57 = arith.subf %53, %56 : vector<1x8x8xf32>
    %58 = math.exp %57 : vector<1x8x8xf32>
    %cst_18 = arith.constant dense<0.000000e+00> : vector<1x8xf32>
    %59 = vector.multi_reduction <add>, %58, %cst_18 [2] : vector<1x8x8xf32> to vector<1x8xf32>
    %60 = vector.shape_cast %59 : vector<1x8xf32> to vector<1x8x1xf32>
    %61 = tpu.reciprocal %60 {approx = true} : vector<1x8x1xf32> -> vector<1x8x1xf32>
    %62 = vector.broadcast %61 : vector<1x8x1xf32> to vector<1x8x8xf32>
    %63 = arith.mulf %58, %62 : vector<1x8x8xf32>
    %64 = arith.truncf %63 : vector<1x8x8xf32> to vector<1x8x8xbf16>
    "tpu.trace_start"() <{level = 10 : i32, message = "bqk,bkd->bqd"}> : () -> ()
    %cst_19 = arith.constant dense<0.000000e+00> : vector<1x8x8xf32>
    %65 = tpu.matmul %64, %50, %cst_19 {dimension_numbers = #tpu.dot_dimension_numbers<[2], [1], [1], [2], [0, 0, 0, 1, 1, 2], [0], [0]>} : vector<1x8x8xbf16>, vector<1x8x8xbf16>, vector<1x8x8xf32> -> vector<1x8x8xf32>
    "tpu.trace_stop"() : () -> ()
    %66 = vector.shape_cast %65 : vector<1x8x8xf32> to vector<8x8xf32>
    %c0_20 = arith.constant 0 : index
    %c8 = arith.constant 8 : index
    %67 = vector.load %arg19[%c0_20, %c8] : memref<8x32xf32, #tpu.memory_space<vmem>>, vector<8x8xf32>
    tpu.vector_store %arg19[%c0_20, %c8], %66 {strides = array<i32>} : memref<8x32xf32, #tpu.memory_space<vmem>>, vector<8x8xf32>,
    %68 = vector.extract_strided_slice %13 {offsets = [0, 16], sizes = [8, 8], strides = [1, 1]} : vector<8x32xbf16> to vector<8x8xbf16>
    %69 = vector.shape_cast %68 : vector<8x8xbf16> to vector<1x8x8xbf16>
    %70 = vector.extract_strided_slice %14 {offsets = [0, 16], sizes = [8, 8], strides = [1, 1]} : vector<8x32xbf16> to vector<8x8xbf16>
    %71 = vector.shape_cast %70 : vector<8x8xbf16> to vector<1x8x8xbf16>
    %72 = vector.extract_strided_slice %15 {offsets = [0, 16], sizes = [8, 8], strides = [1, 1]} : vector<8x32xbf16> to vector<8x8xbf16>
    %73 = vector.shape_cast %72 : vector<8x8xbf16> to vector<1x8x8xbf16>
    "tpu.trace_start"() <{level = 10 : i32, message = "bqd,bkd->bqk"}> : () -> ()
    %cst_21 = arith.constant dense<0.000000e+00> : vector<1x8x8xf32>
    %74 = tpu.matmul %69, %71, %cst_21 {dimension_numbers = #tpu.dot_dimension_numbers<[2], [2], [1], [1], [0, 0, 0, 1, 1, 1], [0], [0]>} : vector<1x8x8xbf16>, vector<1x8x8xbf16>, vector<1x8x8xf32> -> vector<1x8x8xf32>
    "tpu.trace_stop"() : () -> ()
    %75 = vector.shape_cast %21 : vector<8x8xf32> to vector<1x8x8xf32>
    %76 = arith.subf %74, %75 : vector<1x8x8xf32>
    %cst_22 = arith.constant dense<0xFF800000> : vector<1x8xf32>
    %77 = vector.multi_reduction <maximumf>, %76, %cst_22 [2] : vector<1x8x8xf32> to vector<1x8xf32>
    %78 = vector.shape_cast %77 : vector<1x8xf32> to vector<1x8x1xf32>
    %79 = vector.broadcast %78 : vector<1x8x1xf32> to vector<1x8x8xf32>
    %80 = arith.subf %76, %79 : vector<1x8x8xf32>
    %81 = math.exp %80 : vector<1x8x8xf32>
    %cst_23 = arith.constant dense<0.000000e+00> : vector<1x8xf32>
    %82 = vector.multi_reduction <add>, %81, %cst_23 [2] : vector<1x8x8xf32> to vector<1x8xf32>
    %83 = vector.shape_cast %82 : vector<1x8xf32> to vector<1x8x1xf32>
    %84 = tpu.reciprocal %83 {approx = true} : vector<1x8x1xf32> -> vector<1x8x1xf32>
    %85 = vector.broadcast %84 : vector<1x8x1xf32> to vector<1x8x8xf32>
    %86 = arith.mulf %81, %85 : vector<1x8x8xf32>
    %87 = arith.truncf %86 : vector<1x8x8xf32> to vector<1x8x8xbf16>
    "tpu.trace_start"() <{level = 10 : i32, message = "bqk,bkd->bqd"}> : () -> ()
    %cst_24 = arith.constant dense<0.000000e+00> : vector<1x8x8xf32>
    %88 = tpu.matmul %87, %73, %cst_24 {dimension_numbers = #tpu.dot_dimension_numbers<[2], [1], [1], [2], [0, 0, 0, 1, 1, 2], [0], [0]>} : vector<1x8x8xbf16>, vector<1x8x8xbf16>, vector<1x8x8xf32> -> vector<1x8x8xf32>
    "tpu.trace_stop"() : () -> ()
    %89 = vector.shape_cast %88 : vector<1x8x8xf32> to vector<8x8xf32>
    %c0_25 = arith.constant 0 : index
    %c16 = arith.constant 16 : index
    %90 = vector.load %arg19[%c0_25, %c16] : memref<8x32xf32, #tpu.memory_space<vmem>>, vector<8x8xf32>
    tpu.vector_store %arg19[%c0_25, %c16], %89 {strides = array<i32>} : memref<8x32xf32, #tpu.memory_space<vmem>>, vector<8x8xf32>,
    %91 = vector.extract_strided_slice %13 {offsets = [0, 24], sizes = [8, 8], strides = [1, 1]} : vector<8x32xbf16> to vector<8x8xbf16>
    %92 = vector.shape_cast %91 : vector<8x8xbf16> to vector<1x8x8xbf16>
    %93 = vector.extract_strided_slice %14 {offsets = [0, 24], sizes = [8, 8], strides = [1, 1]} : vector<8x32xbf16> to vector<8x8xbf16>
    %94 = vector.shape_cast %93 : vector<8x8xbf16> to vector<1x8x8xbf16>
    %95 = vector.extract_strided_slice %15 {offsets = [0, 24], sizes = [8, 8], strides = [1, 1]} : vector<8x32xbf16> to vector<8x8xbf16>
    %96 = vector.shape_cast %95 : vector<8x8xbf16> to vector<1x8x8xbf16>
    "tpu.trace_start"() <{level = 10 : i32, message = "bqd,bkd->bqk"}> : () -> ()
    %cst_26 = arith.constant dense<0.000000e+00> : vector<1x8x8xf32>
    %97 = tpu.matmul %92, %94, %cst_26 {dimension_numbers = #tpu.dot_dimension_numbers<[2], [2], [1], [1], [0, 0, 0, 1, 1, 1], [0], [0]>} : vector<1x8x8xbf16>, vector<1x8x8xbf16>, vector<1x8x8xf32> -> vector<1x8x8xf32>
    "tpu.trace_stop"() : () -> ()
    %98 = vector.shape_cast %21 : vector<8x8xf32> to vector<1x8x8xf32>
    %99 = arith.subf %97, %98 : vector<1x8x8xf32>
    %cst_27 = arith.constant dense<0xFF800000> : vector<1x8xf32>
    %100 = vector.multi_reduction <maximumf>, %99, %cst_27 [2] : vector<1x8x8xf32> to vector<1x8xf32>
    %101 = vector.shape_cast %100 : vector<1x8xf32> to vector<1x8x1xf32>
    %102 = vector.broadcast %101 : vector<1x8x1xf32> to vector<1x8x8xf32>
    %103 = arith.subf %99, %102 : vector<1x8x8xf32>
    %104 = math.exp %103 : vector<1x8x8xf32>
    %cst_28 = arith.constant dense<0.000000e+00> : vector<1x8xf32>
    %105 = vector.multi_reduction <add>, %104, %cst_28 [2] : vector<1x8x8xf32> to vector<1x8xf32>
    %106 = vector.shape_cast %105 : vector<1x8xf32> to vector<1x8x1xf32>
    %107 = tpu.reciprocal %106 {approx = true} : vector<1x8x1xf32> -> vector<1x8x1xf32>
    %108 = vector.broadcast %107 : vector<1x8x1xf32> to vector<1x8x8xf32>
    %109 = arith.mulf %104, %108 : vector<1x8x8xf32>
    %110 = arith.truncf %109 : vector<1x8x8xf32> to vector<1x8x8xbf16>
    "tpu.trace_start"() <{level = 10 : i32, message = "bqk,bkd->bqd"}> : () -> ()
    %cst_29 = arith.constant dense<0.000000e+00> : vector<1x8x8xf32>
    %111 = tpu.matmul %110, %96, %cst_29 {dimension_numbers = #tpu.dot_dimension_numbers<[2], [1], [1], [2], [0, 0, 0, 1, 1, 2], [0], [0]>} : vector<1x8x8xbf16>, vector<1x8x8xbf16>, vector<1x8x8xf32> -> vector<1x8x8xf32>
    "tpu.trace_stop"() : () -> ()
    %112 = vector.shape_cast %111 : vector<1x8x8xf32> to vector<8x8xf32>
    %c0_30 = arith.constant 0 : index
    %c24 = arith.constant 24 : index
    %113 = vector.load %arg19[%c0_30, %c24] : memref<8x32xf32, #tpu.memory_space<vmem>>, vector<8x8xf32>
    tpu.vector_store %arg19[%c0_30, %c24], %112 {strides = array<i32>} : memref<8x32xf32, #tpu.memory_space<vmem>>, vector<8x8xf32>,
    %c0_31 = arith.constant 0 : index
    %c0_32 = arith.constant 0 : index
    %114 = vector.load %arg19[%c0_31, %c0_32] : memref<8x32xf32, #tpu.memory_space<vmem>>, vector<8x32xf32>
    %115 = arith.truncf %114 : vector<8x32xf32> to vector<8x32xbf16>
    %c0_33 = arith.constant 0 : index
    %c0_34 = arith.constant 0 : index
    %116 = vector.load %arg4[%c0_33, %c0_34] : memref<32x32xbf16, #tpu.memory_space<vmem>>, vector<32x32xbf16>
    %cst_35 = arith.constant dense<0.000000e+00> : vector<8x32xf32>
    %117 = tpu.matmul %115, %116, %cst_35 {dimension_numbers = #tpu.dot_dimension_numbers<[1], [0], [0], [1], [0, 0, 1, 1], [], []>} : vector<8x32xbf16>, vector<32x32xbf16>, vector<8x32xf32> -> vector<8x32xf32>
    %118 = arith.addf %2, %117 : vector<8x32xf32>
    %c0_36 = arith.constant 0 : index
    %c0_37 = arith.constant 0 : index
    %119 = vector.load %arg5[%c0_36, %c0_37] : memref<1x32xf32, #tpu.memory_space<vmem>>, vector<1x32xf32>
    %c0_38 = arith.constant 0 : index
    %c0_39 = arith.constant 0 : index
    %120 = vector.load %arg6[%c0_38, %c0_39] : memref<1x32xf32, #tpu.memory_space<vmem>>, vector<1x32xf32>
    %cst_40 = arith.constant dense<0.000000e+00> : vector<8xf32>
    %121 = vector.multi_reduction <add>, %118, %cst_40 [1] : vector<8x32xf32> to vector<8xf32>
    %122 = vector.shape_cast %121 : vector<8xf32> to vector<8x1xf32>
    %cst_41 = arith.constant 3.200000e+01 : f32
    %123 = vector.broadcast %cst_41 : f32 to vector<8x1xf32>
    %124 = arith.divf %122, %123 : vector<8x1xf32>
    %125 = vector.broadcast %124 : vector<8x1xf32> to vector<8x32xf32>
    %126 = arith.subf %118, %125 : vector<8x32xf32>
    %127 = arith.mulf %126, %126 : vector<8x32xf32>
    %cst_42 = arith.constant dense<0.000000e+00> : vector<8xf32>
    %128 = vector.multi_reduction <add>, %127, %cst_42 [1] : vector<8x32xf32> to vector<8xf32>
    %129 = vector.shape_cast %128 : vector<8xf32> to vector<8x1xf32>
    %cst_43 = arith.constant 0.0322580636 : f32
    %130 = vector.broadcast %cst_43 : f32 to vector<8x1xf32>
    %131 = arith.mulf %129, %130 : vector<8x1xf32>
    %132 = math.sqrt %131 : vector<8x1xf32>
    %cst_44 = arith.constant 9.99999997E-7 : f32
    %133 = vector.broadcast %cst_44 : f32 to vector<8x1xf32>
    %134 = arith.addf %132, %133 : vector<8x1xf32>
    %135 = tpu.reciprocal %134 : vector<8x1xf32> -> vector<8x1xf32>
    %136 = vector.broadcast %135 : vector<8x1xf32> to vector<8x32xf32>
    %137 = arith.mulf %126, %136 : vector<8x32xf32>
    %138 = vector.broadcast %119 : vector<1x32xf32> to vector<8x32xf32>
    %139 = arith.mulf %138, %137 : vector<8x32xf32>
    %140 = vector.broadcast %120 : vector<1x32xf32> to vector<8x32xf32>
    %141 = arith.addf %139, %140 : vector<8x32xf32>
    %142 = arith.truncf %141 : vector<8x32xf32> to vector<8x32xbf16>
    %c0_45 = arith.constant 0 : index
    %c0_46 = arith.constant 0 : index
    %143 = vector.load %arg7[%c0_45, %c0_46] : memref<32x32xbf16, #tpu.memory_space<vmem>>, vector<32x32xbf16>
    %cst_47 = arith.constant dense<0.000000e+00> : vector<8x32xf32>
    %144 = tpu.matmul %142, %143, %cst_47 {dimension_numbers = #tpu.dot_dimension_numbers<[1], [0], [0], [1], [0, 0, 1, 1], [], []>} : vector<8x32xbf16>, vector<32x32xbf16>, vector<8x32xf32> -> vector<8x32xf32>
    %c0_48 = arith.constant 0 : index
    %c0_49 = arith.constant 0 : index
    %145 = vector.load %arg8[%c0_48, %c0_49] : memref<32x64xbf16, #tpu.memory_space<vmem>>, vector<32x64xbf16>
    %cst_50 = arith.constant dense<0.000000e+00> : vector<8x64xf32>
    %146 = tpu.matmul %5, %145, %cst_50 {dimension_numbers = #tpu.dot_dimension_numbers<[1], [0], [0], [1], [0, 0, 1, 1], [], []>} : vector<8x32xbf16>, vector<32x64xbf16>, vector<8x64xf32> -> vector<8x64xf32>
    %147 = vector.extract_strided_slice %146 {offsets = [0, 0], sizes = [8, 32], strides = [1, 1]} : vector<8x64xf32> to vector<8x32xf32>
    %148 = vector.extract_strided_slice %146 {offsets = [0, 32], sizes = [8, 32], strides = [1, 1]} : vector<8x64xf32> to vector<8x32xf32>
    %cst_51 = arith.constant 0.176776692 : f32
    %149 = vector.broadcast %cst_51 : f32 to vector<8x32xf32>
    %150 = arith.mulf %144, %149 : vector<8x32xf32>
    %151 = arith.truncf %150 : vector<8x32xf32> to vector<8x32xbf16>
    %152 = arith.truncf %147 : vector<8x32xf32> to vector<8x32xbf16>
    %153 = arith.truncf %148 : vector<8x32xf32> to vector<8x32xbf16>
    %154 = vector.extract_strided_slice %151 {offsets = [0, 0], sizes = [8, 8], strides = [1, 1]} : vector<8x32xbf16> to vector<8x8xbf16>
    %155 = vector.shape_cast %154 : vector<8x8xbf16> to vector<1x8x8xbf16>
    %156 = vector.extract_strided_slice %152 {offsets = [0, 0], sizes = [8, 8], strides = [1, 1]} : vector<8x32xbf16> to vector<8x8xbf16>
    %157 = vector.shape_cast %156 : vector<8x8xbf16> to vector<1x8x8xbf16>
    %158 = vector.extract_strided_slice %153 {offsets = [0, 0], sizes = [8, 8], strides = [1, 1]} : vector<8x32xbf16> to vector<8x8xbf16>
    %159 = vector.shape_cast %158 : vector<8x8xbf16> to vector<1x8x8xbf16>
    "tpu.trace_start"() <{level = 10 : i32, message = "bqd,bkd->bqk"}> : () -> ()
    %cst_52 = arith.constant dense<0.000000e+00> : vector<1x8x8xf32>
    %160 = tpu.matmul %155, %157, %cst_52 {dimension_numbers = #tpu.dot_dimension_numbers<[2], [2], [1], [1], [0, 0, 0, 1, 1, 1], [0], [0]>} : vector<1x8x8xbf16>, vector<1x8x8xbf16>, vector<1x8x8xf32> -> vector<1x8x8xf32>
    "tpu.trace_stop"() : () -> ()
    %cst_53 = arith.constant dense<0xFF800000> : vector<1x8xf32>
    %161 = vector.multi_reduction <maximumf>, %160, %cst_53 [2] : vector<1x8x8xf32> to vector<1x8xf32>
    %162 = vector.shape_cast %161 : vector<1x8xf32> to vector<1x8x1xf32>
    %163 = vector.broadcast %162 : vector<1x8x1xf32> to vector<1x8x8xf32>
    %164 = arith.subf %160, %163 : vector<1x8x8xf32>
    %165 = math.exp %164 : vector<1x8x8xf32>
    %cst_54 = arith.constant dense<0.000000e+00> : vector<1x8xf32>
    %166 = vector.multi_reduction <add>, %165, %cst_54 [2] : vector<1x8x8xf32> to vector<1x8xf32>
    %167 = vector.shape_cast %166 : vector<1x8xf32> to vector<1x8x1xf32>
    %168 = tpu.reciprocal %167 {approx = true} : vector<1x8x1xf32> -> vector<1x8x1xf32>
    %169 = vector.broadcast %168 : vector<1x8x1xf32> to vector<1x8x8xf32>
    %170 = arith.mulf %165, %169 : vector<1x8x8xf32>
    %171 = arith.truncf %170 : vector<1x8x8xf32> to vector<1x8x8xbf16>
    "tpu.trace_start"() <{level = 10 : i32, message = "bqk,bkd->bqd"}> : () -> ()
    %cst_55 = arith.constant dense<0.000000e+00> : vector<1x8x8xf32>
    %172 = tpu.matmul %171, %159, %cst_55 {dimension_numbers = #tpu.dot_dimension_numbers<[2], [1], [1], [2], [0, 0, 0, 1, 1, 2], [0], [0]>} : vector<1x8x8xbf16>, vector<1x8x8xbf16>, vector<1x8x8xf32> -> vector<1x8x8xf32>
    "tpu.trace_stop"() : () -> ()
    %173 = vector.shape_cast %172 : vector<1x8x8xf32> to vector<8x8xf32>
    %c0_56 = arith.constant 0 : index
    %c0_57 = arith.constant 0 : index
    %174 = vector.load %arg19[%c0_56, %c0_57] : memref<8x32xf32, #tpu.memory_space<vmem>>, vector<8x8xf32>
    tpu.vector_store %arg19[%c0_56, %c0_57], %173 {strides = array<i32>} : memref<8x32xf32, #tpu.memory_space<vmem>>, vector<8x8xf32>,
    %175 = vector.extract_strided_slice %151 {offsets = [0, 8], sizes = [8, 8], strides = [1, 1]} : vector<8x32xbf16> to vector<8x8xbf16>
    %176 = vector.shape_cast %175 : vector<8x8xbf16> to vector<1x8x8xbf16>
    %177 = vector.extract_strided_slice %152 {offsets = [0, 8], sizes = [8, 8], strides = [1, 1]} : vector<8x32xbf16> to vector<8x8xbf16>
    %178 = vector.shape_cast %177 : vector<8x8xbf16> to vector<1x8x8xbf16>
    %179 = vector.extract_strided_slice %153 {offsets = [0, 8], sizes = [8, 8], strides = [1, 1]} : vector<8x32xbf16> to vector<8x8xbf16>
    %180 = vector.shape_cast %179 : vector<8x8xbf16> to vector<1x8x8xbf16>
    "tpu.trace_start"() <{level = 10 : i32, message = "bqd,bkd->bqk"}> : () -> ()
    %cst_58 = arith.constant dense<0.000000e+00> : vector<1x8x8xf32>
    %181 = tpu.matmul %176, %178, %cst_58 {dimension_numbers = #tpu.dot_dimension_numbers<[2], [2], [1], [1], [0, 0, 0, 1, 1, 1], [0], [0]>} : vector<1x8x8xbf16>, vector<1x8x8xbf16>, vector<1x8x8xf32> -> vector<1x8x8xf32>
    "tpu.trace_stop"() : () -> ()
    %cst_59 = arith.constant dense<0xFF800000> : vector<1x8xf32>
    %182 = vector.multi_reduction <maximumf>, %181, %cst_59 [2] : vector<1x8x8xf32> to vector<1x8xf32>
    %183 = vector.shape_cast %182 : vector<1x8xf32> to vector<1x8x1xf32>
    %184 = vector.broadcast %183 : vector<1x8x1xf32> to vector<1x8x8xf32>
    %185 = arith.subf %181, %184 : vector<1x8x8xf32>
    %186 = math.exp %185 : vector<1x8x8xf32>
    %cst_60 = arith.constant dense<0.000000e+00> : vector<1x8xf32>
    %187 = vector.multi_reduction <add>, %186, %cst_60 [2] : vector<1x8x8xf32> to vector<1x8xf32>
    %188 = vector.shape_cast %187 : vector<1x8xf32> to vector<1x8x1xf32>
    %189 = tpu.reciprocal %188 {approx = true} : vector<1x8x1xf32> -> vector<1x8x1xf32>
    %190 = vector.broadcast %189 : vector<1x8x1xf32> to vector<1x8x8xf32>
    %191 = arith.mulf %186, %190 : vector<1x8x8xf32>
    %192 = arith.truncf %191 : vector<1x8x8xf32> to vector<1x8x8xbf16>
    "tpu.trace_start"() <{level = 10 : i32, message = "bqk,bkd->bqd"}> : () -> ()
    %cst_61 = arith.constant dense<0.000000e+00> : vector<1x8x8xf32>
    %193 = tpu.matmul %192, %180, %cst_61 {dimension_numbers = #tpu.dot_dimension_numbers<[2], [1], [1], [2], [0, 0, 0, 1, 1, 2], [0], [0]>} : vector<1x8x8xbf16>, vector<1x8x8xbf16>, vector<1x8x8xf32> -> vector<1x8x8xf32>
    "tpu.trace_stop"() : () -> ()
    %194 = vector.shape_cast %193 : vector<1x8x8xf32> to vector<8x8xf32>
    %c0_62 = arith.constant 0 : index
    %c8_63 = arith.constant 8 : index
    %195 = vector.load %arg19[%c0_62, %c8_63] : memref<8x32xf32, #tpu.memory_space<vmem>>, vector<8x8xf32>
    tpu.vector_store %arg19[%c0_62, %c8_63], %194 {strides = array<i32>} : memref<8x32xf32, #tpu.memory_space<vmem>>, vector<8x8xf32>,
    %196 = vector.extract_strided_slice %151 {offsets = [0, 16], sizes = [8, 8], strides = [1, 1]} : vector<8x32xbf16> to vector<8x8xbf16>
    %197 = vector.shape_cast %196 : vector<8x8xbf16> to vector<1x8x8xbf16>
    %198 = vector.extract_strided_slice %152 {offsets = [0, 16], sizes = [8, 8], strides = [1, 1]} : vector<8x32xbf16> to vector<8x8xbf16>
    %199 = vector.shape_cast %198 : vector<8x8xbf16> to vector<1x8x8xbf16>
    %200 = vector.extract_strided_slice %153 {offsets = [0, 16], sizes = [8, 8], strides = [1, 1]} : vector<8x32xbf16> to vector<8x8xbf16>
    %201 = vector.shape_cast %200 : vector<8x8xbf16> to vector<1x8x8xbf16>
    "tpu.trace_start"() <{level = 10 : i32, message = "bqd,bkd->bqk"}> : () -> ()
    %cst_64 = arith.constant dense<0.000000e+00> : vector<1x8x8xf32>
    %202 = tpu.matmul %197, %199, %cst_64 {dimension_numbers = #tpu.dot_dimension_numbers<[2], [2], [1], [1], [0, 0, 0, 1, 1, 1], [0], [0]>} : vector<1x8x8xbf16>, vector<1x8x8xbf16>, vector<1x8x8xf32> -> vector<1x8x8xf32>
    "tpu.trace_stop"() : () -> ()
    %cst_65 = arith.constant dense<0xFF800000> : vector<1x8xf32>
    %203 = vector.multi_reduction <maximumf>, %202, %cst_65 [2] : vector<1x8x8xf32> to vector<1x8xf32>
    %204 = vector.shape_cast %203 : vector<1x8xf32> to vector<1x8x1xf32>
    %205 = vector.broadcast %204 : vector<1x8x1xf32> to vector<1x8x8xf32>
    %206 = arith.subf %202, %205 : vector<1x8x8xf32>
    %207 = math.exp %206 : vector<1x8x8xf32>
    %cst_66 = arith.constant dense<0.000000e+00> : vector<1x8xf32>
    %208 = vector.multi_reduction <add>, %207, %cst_66 [2] : vector<1x8x8xf32> to vector<1x8xf32>
    %209 = vector.shape_cast %208 : vector<1x8xf32> to vector<1x8x1xf32>
    %210 = tpu.reciprocal %209 {approx = true} : vector<1x8x1xf32> -> vector<1x8x1xf32>
    %211 = vector.broadcast %210 : vector<1x8x1xf32> to vector<1x8x8xf32>
    %212 = arith.mulf %207, %211 : vector<1x8x8xf32>
    %213 = arith.truncf %212 : vector<1x8x8xf32> to vector<1x8x8xbf16>
    "tpu.trace_start"() <{level = 10 : i32, message = "bqk,bkd->bqd"}> : () -> ()
    %cst_67 = arith.constant dense<0.000000e+00> : vector<1x8x8xf32>
    %214 = tpu.matmul %213, %201, %cst_67 {dimension_numbers = #tpu.dot_dimension_numbers<[2], [1], [1], [2], [0, 0, 0, 1, 1, 2], [0], [0]>} : vector<1x8x8xbf16>, vector<1x8x8xbf16>, vector<1x8x8xf32> -> vector<1x8x8xf32>
    "tpu.trace_stop"() : () -> ()
    %215 = vector.shape_cast %214 : vector<1x8x8xf32> to vector<8x8xf32>
    %c0_68 = arith.constant 0 : index
    %c16_69 = arith.constant 16 : index
    %216 = vector.load %arg19[%c0_68, %c16_69] : memref<8x32xf32, #tpu.memory_space<vmem>>, vector<8x8xf32>
    tpu.vector_store %arg19[%c0_68, %c16_69], %215 {strides = array<i32>} : memref<8x32xf32, #tpu.memory_space<vmem>>, vector<8x8xf32>,
    %217 = vector.extract_strided_slice %151 {offsets = [0, 24], sizes = [8, 8], strides = [1, 1]} : vector<8x32xbf16> to vector<8x8xbf16>
    %218 = vector.shape_cast %217 : vector<8x8xbf16> to vector<1x8x8xbf16>
    %219 = vector.extract_strided_slice %152 {offsets = [0, 24], sizes = [8, 8], strides = [1, 1]} : vector<8x32xbf16> to vector<8x8xbf16>
    %220 = vector.shape_cast %219 : vector<8x8xbf16> to vector<1x8x8xbf16>
    %221 = vector.extract_strided_slice %153 {offsets = [0, 24], sizes = [8, 8], strides = [1, 1]} : vector<8x32xbf16> to vector<8x8xbf16>
    %222 = vector.shape_cast %221 : vector<8x8xbf16> to vector<1x8x8xbf16>
    "tpu.trace_start"() <{level = 10 : i32, message = "bqd,bkd->bqk"}> : () -> ()
    %cst_70 = arith.constant dense<0.000000e+00> : vector<1x8x8xf32>
    %223 = tpu.matmul %218, %220, %cst_70 {dimension_numbers = #tpu.dot_dimension_numbers<[2], [2], [1], [1], [0, 0, 0, 1, 1, 1], [0], [0]>} : vector<1x8x8xbf16>, vector<1x8x8xbf16>, vector<1x8x8xf32> -> vector<1x8x8xf32>
    "tpu.trace_stop"() : () -> ()
    %cst_71 = arith.constant dense<0xFF800000> : vector<1x8xf32>
    %224 = vector.multi_reduction <maximumf>, %223, %cst_71 [2] : vector<1x8x8xf32> to vector<1x8xf32>
    %225 = vector.shape_cast %224 : vector<1x8xf32> to vector<1x8x1xf32>
    %226 = vector.broadcast %225 : vector<1x8x1xf32> to vector<1x8x8xf32>
    %227 = arith.subf %223, %226 : vector<1x8x8xf32>
    %228 = math.exp %227 : vector<1x8x8xf32>
    %cst_72 = arith.constant dense<0.000000e+00> : vector<1x8xf32>
    %229 = vector.multi_reduction <add>, %228, %cst_72 [2] : vector<1x8x8xf32> to vector<1x8xf32>
    %230 = vector.shape_cast %229 : vector<1x8xf32> to vector<1x8x1xf32>
    %231 = tpu.reciprocal %230 {approx = true} : vector<1x8x1xf32> -> vector<1x8x1xf32>
    %232 = vector.broadcast %231 : vector<1x8x1xf32> to vector<1x8x8xf32>
    %233 = arith.mulf %228, %232 : vector<1x8x8xf32>
    %234 = arith.truncf %233 : vector<1x8x8xf32> to vector<1x8x8xbf16>
    "tpu.trace_start"() <{level = 10 : i32, message = "bqk,bkd->bqd"}> : () -> ()
    %cst_73 = arith.constant dense<0.000000e+00> : vector<1x8x8xf32>
    %235 = tpu.matmul %234, %222, %cst_73 {dimension_numbers = #tpu.dot_dimension_numbers<[2], [1], [1], [2], [0, 0, 0, 1, 1, 2], [0], [0]>} : vector<1x8x8xbf16>, vector<1x8x8xbf16>, vector<1x8x8xf32> -> vector<1x8x8xf32>
    "tpu.trace_stop"() : () -> ()
    %236 = vector.shape_cast %235 : vector<1x8x8xf32> to vector<8x8xf32>
    %c0_74 = arith.constant 0 : index
    %c24_75 = arith.constant 24 : index
    %237 = vector.load %arg19[%c0_74, %c24_75] : memref<8x32xf32, #tpu.memory_space<vmem>>, vector<8x8xf32>
    tpu.vector_store %arg19[%c0_74, %c24_75], %236 {strides = array<i32>} : memref<8x32xf32, #tpu.memory_space<vmem>>, vector<8x8xf32>,
    %c0_76 = arith.constant 0 : index
    %c0_77 = arith.constant 0 : index
    %238 = vector.load %arg19[%c0_76, %c0_77] : memref<8x32xf32, #tpu.memory_space<vmem>>, vector<8x32xf32>
    %239 = arith.truncf %238 : vector<8x32xf32> to vector<8x32xbf16>
    %c0_78 = arith.constant 0 : index
    %c0_79 = arith.constant 0 : index
    %240 = vector.load %arg9[%c0_78, %c0_79] : memref<32x32xbf16, #tpu.memory_space<vmem>>, vector<32x32xbf16>
    %cst_80 = arith.constant dense<0.000000e+00> : vector<8x32xf32>
    %241 = tpu.matmul %239, %240, %cst_80 {dimension_numbers = #tpu.dot_dimension_numbers<[1], [0], [0], [1], [0, 0, 1, 1], [], []>} : vector<8x32xbf16>, vector<32x32xbf16>, vector<8x32xf32> -> vector<8x32xf32>
    %242 = arith.addf %141, %241 : vector<8x32xf32>
    %c0_81 = arith.constant 0 : index
    %c0_82 = arith.constant 0 : index
    %243 = vector.load %arg10[%c0_81, %c0_82] : memref<1x32xf32, #tpu.memory_space<vmem>>, vector<1x32xf32>
    %c0_83 = arith.constant 0 : index
    %c0_84 = arith.constant 0 : index
    %244 = vector.load %arg11[%c0_83, %c0_84] : memref<1x32xf32, #tpu.memory_space<vmem>>, vector<1x32xf32>
    %cst_85 = arith.constant dense<0.000000e+00> : vector<8xf32>
    %245 = vector.multi_reduction <add>, %242, %cst_85 [1] : vector<8x32xf32> to vector<8xf32>
    %246 = vector.shape_cast %245 : vector<8xf32> to vector<8x1xf32>
    %cst_86 = arith.constant 3.200000e+01 : f32
    %247 = vector.broadcast %cst_86 : f32 to vector<8x1xf32>
    %248 = arith.divf %246, %247 : vector<8x1xf32>
    %249 = vector.broadcast %248 : vector<8x1xf32> to vector<8x32xf32>
    %250 = arith.subf %242, %249 : vector<8x32xf32>
    %251 = arith.mulf %250, %250 : vector<8x32xf32>
    %cst_87 = arith.constant dense<0.000000e+00> : vector<8xf32>
    %252 = vector.multi_reduction <add>, %251, %cst_87 [1] : vector<8x32xf32> to vector<8xf32>
    %253 = vector.shape_cast %252 : vector<8xf32> to vector<8x1xf32>
    %cst_88 = arith.constant 0.0322580636 : f32
    %254 = vector.broadcast %cst_88 : f32 to vector<8x1xf32>
    %255 = arith.mulf %253, %254 : vector<8x1xf32>
    %256 = math.sqrt %255 : vector<8x1xf32>
    %cst_89 = arith.constant 9.99999997E-7 : f32
    %257 = vector.broadcast %cst_89 : f32 to vector<8x1xf32>
    %258 = arith.addf %256, %257 : vector<8x1xf32>
    %259 = tpu.reciprocal %258 : vector<8x1xf32> -> vector<8x1xf32>
    %260 = vector.broadcast %259 : vector<8x1xf32> to vector<8x32xf32>
    %261 = arith.mulf %250, %260 : vector<8x32xf32>
    %262 = vector.broadcast %243 : vector<1x32xf32> to vector<8x32xf32>
    %263 = arith.mulf %262, %261 : vector<8x32xf32>
    %264 = vector.broadcast %244 : vector<1x32xf32> to vector<8x32xf32>
    %265 = arith.addf %263, %264 : vector<8x32xf32>
    %266 = arith.truncf %265 : vector<8x32xf32> to vector<8x32xbf16>
    %c0_90 = arith.constant 0 : index
    %c0_91 = arith.constant 0 : index
    %267 = vector.load %arg12[%c0_90, %c0_91] : memref<32x64xbf16, #tpu.memory_space<vmem>>, vector<32x64xbf16>
    %cst_92 = arith.constant dense<0.000000e+00> : vector<8x64xf32>
    %268 = tpu.matmul %266, %267, %cst_92 {dimension_numbers = #tpu.dot_dimension_numbers<[1], [0], [0], [1], [0, 0, 1, 1], [], []>} : vector<8x32xbf16>, vector<32x64xbf16>, vector<8x64xf32> -> vector<8x64xf32>
    %c0_93 = arith.constant 0 : index
    %c0_94 = arith.constant 0 : index
    %269 = vector.load %arg13[%c0_93, %c0_94] : memref<1x64xf32, #tpu.memory_space<vmem>>, vector<1x64xf32>
    %270 = vector.broadcast %269 : vector<1x64xf32> to vector<8x64xf32>
    %271 = arith.addf %268, %270 : vector<8x64xf32>
    %cst_95 = arith.constant 0.000000e+00 : f32
    %272 = vector.broadcast %cst_95 : f32 to vector<8x64xf32>
    %273 = arith.maximumf %271, %272 : vector<8x64xf32>
    %274 = arith.truncf %273 : vector<8x64xf32> to vector<8x64xbf16>
    %c0_96 = arith.constant 0 : index
    %c0_97 = arith.constant 0 : index
    %275 = vector.load %arg14[%c0_96, %c0_97] : memref<64x32xbf16, #tpu.memory_space<vmem>>, vector<64x32xbf16>
    %cst_98 = arith.constant dense<0.000000e+00> : vector<8x32xf32>
    %276 = tpu.matmul %274, %275, %cst_98 {dimension_numbers = #tpu.dot_dimension_numbers<[1], [0], [0], [1], [0, 0, 1, 1], [], []>} : vector<8x64xbf16>, vector<64x32xbf16>, vector<8x32xf32> -> vector<8x32xf32>
    %c0_99 = arith.constant 0 : index
    %c0_100 = arith.constant 0 : index
    %277 = vector.load %arg15[%c0_99, %c0_100] : memref<1x32xf32, #tpu.memory_space<vmem>>, vector<1x32xf32>
    %278 = vector.broadcast %277 : vector<1x32xf32> to vector<8x32xf32>
    %279 = arith.addf %276, %278 : vector<8x32xf32>
    %280 = arith.addf %265, %279 : vector<8x32xf32>
    %c0_101 = arith.constant 0 : index
    %c0_102 = arith.constant 0 : index
    %281 = vector.load %arg16[%c0_101, %c0_102] : memref<1x32xf32, #tpu.memory_space<vmem>>, vector<1x32xf32>
    %c0_103 = arith.constant 0 : index
    %c0_104 = arith.constant 0 : index
    %282 = vector.load %arg17[%c0_103, %c0_104] : memref<1x32xf32, #tpu.memory_space<vmem>>, vector<1x32xf32>
    %cst_105 = arith.constant dense<0.000000e+00> : vector<8xf32>
    %283 = vector.multi_reduction <add>, %280, %cst_105 [1] : vector<8x32xf32> to vector<8xf32>
    %284 = vector.shape_cast %283 : vector<8xf32> to vector<8x1xf32>
    %cst_106 = arith.constant 3.200000e+01 : f32
    %285 = vector.broadcast %cst_106 : f32 to vector<8x1xf32>
    %286 = arith.divf %284, %285 : vector<8x1xf32>
    %287 = vector.broadcast %286 : vector<8x1xf32> to vector<8x32xf32>
    %288 = arith.subf %280, %287 : vector<8x32xf32>
    %289 = arith.mulf %288, %288 : vector<8x32xf32>
    %cst_107 = arith.constant dense<0.000000e+00> : vector<8xf32>
    %290 = vector.multi_reduction <add>, %289, %cst_107 [1] : vector<8x32xf32> to vector<8xf32>
    %291 = vector.shape_cast %290 : vector<8xf32> to vector<8x1xf32>
    %cst_108 = arith.constant 0.0322580636 : f32
    %292 = vector.broadcast %cst_108 : f32 to vector<8x1xf32>
    %293 = arith.mulf %291, %292 : vector<8x1xf32>
    %294 = math.sqrt %293 : vector<8x1xf32>
    %cst_109 = arith.constant 9.99999997E-7 : f32
    %295 = vector.broadcast %cst_109 : f32 to vector<8x1xf32>
    %296 = arith.addf %294, %295 : vector<8x1xf32>
    %297 = tpu.reciprocal %296 : vector<8x1xf32> -> vector<8x1xf32>
    %298 = vector.broadcast %297 : vector<8x1xf32> to vector<8x32xf32>
    %299 = arith.mulf %288, %298 : vector<8x32xf32>
    %300 = vector.broadcast %281 : vector<1x32xf32> to vector<8x32xf32>
    %301 = arith.mulf %300, %299 : vector<8x32xf32>
    %302 = vector.broadcast %282 : vector<1x32xf32> to vector<8x32xf32>
    %303 = arith.addf %301, %302 : vector<8x32xf32>
    %304 = vector.shape_cast %303 : vector<8x32xf32> to vector<1x8x32xf32>
    %c0_110 = arith.constant 0 : index
    %c0_111 = arith.constant 0 : index
    %c0_112 = arith.constant 0 : index
    %305 = vector.load %arg18[%c0_110, %c0_111, %c0_112] : memref<1x8x32xf32, #tpu.memory_space<vmem>>, vector<1x8x32xf32>
    tpu.vector_store %arg18[%c0_110, %c0_111, %c0_112], %304 {strides = array<i32>} : memref<1x8x32xf32, #tpu.memory_space<vmem>>, vector<1x8x32xf32>,
    return
  }
  func.func @transform_0(%arg0: i32) -> (i32, i32, i32) {
    %c0_i32 = arith.constant 0 : i32
    %c0_i32_0 = arith.constant 0 : i32
    %c0_i32_1 = arith.constant 0 : i32
    return %arg0, %c0_i32, %c0_i32_0 : i32, i32, i32
  }
  func.func @transform_1(%arg0: i32) -> (i32, i32, i32) {
    %c0_i32 = arith.constant 0 : i32
    %c0_i32_0 = arith.constant 0 : i32
    %c0_i32_1 = arith.constant 0 : i32
    return %arg0, %c0_i32, %c0_i32_0 : i32, i32, i32
  }
  func.func @transform_2(%arg0: i32) -> (i32, i32) {
    %c0_i32 = arith.constant 0 : i32
    %c0_i32_0 = arith.constant 0 : i32
    %c0_i32_1 = arith.constant 0 : i32
    return %c0_i32, %c0_i32_0 : i32, i32
  }
  func.func @transform_3(%arg0: i32) -> (i32, i32) {
    %c0_i32 = arith.constant 0 : i32
    %c0_i32_0 = arith.constant 0 : i32
    %c0_i32_1 = arith.constant 0 : i32
    return %c0_i32, %c0_i32_0 : i32, i32
  }
  func.func @transform_4(%arg0: i32) -> (i32, i32) {
    %c0_i32 = arith.constant 0 : i32
    %c0_i32_0 = arith.constant 0 : i32
    %c0_i32_1 = arith.constant 0 : i32
    return %c0_i32, %c0_i32_0 : i32, i32
  }
  func.func @transform_5(%arg0: i32) -> (i32, i32) {
    %c0_i32 = arith.constant 0 : i32
    %c0_i32_0 = arith.constant 0 : i32
    %c0_i32_1 = arith.constant 0 : i32
    return %c0_i32, %c0_i32_0 : i32, i32
  }
  func.func @transform_6(%arg0: i32) -> (i32, i32) {
    %c0_i32 = arith.constant 0 : i32
    %c0_i32_0 = arith.constant 0 : i32
    %c0_i32_1 = arith.constant 0 : i32
    return %c0_i32, %c0_i32_0 : i32, i32
  }
  func.func @transform_7(%arg0: i32) -> (i32, i32) {
    %c0_i32 = arith.constant 0 : i32
    %c0_i32_0 = arith.constant 0 : i32
    %c0_i32_1 = arith.constant 0 : i32
    return %c0_i32, %c0_i32_0 : i32, i32
  }
  func.func @transform_8(%arg0: i32) -> (i32, i32) {
    %c0_i32 = arith.constant 0 : i32
    %c0_i32_0 = arith.constant 0 : i32
    %c0_i32_1 = arith.constant 0 : i32
    return %c0_i32, %c0_i32_0 : i32, i32
  }
  func.func @transform_9(%arg0: i32) -> (i32, i32) {
    %c0_i32 = arith.constant 0 : i32
    %c0_i32_0 = arith.constant 0 : i32
    %c0_i32_1 = arith.constant 0 : i32
    return %c0_i32, %c0_i32_0 : i32, i32
  }
  func.func @transform_10(%arg0: i32) -> (i32, i32) {
    %c0_i32 = arith.constant 0 : i32
    %c0_i32_0 = arith.constant 0 : i32
    %c0_i32_1 = arith.constant 0 : i32
    return %c0_i32, %c0_i32_0 : i32, i32
  }
  func.func @transform_11(%arg0: i32) -> (i32, i32) {
    %c0_i32 = arith.constant 0 : i32
    %c0_i32_0 = arith.constant 0 : i32
    %c0_i32_1 = arith.constant 0 : i32
    return %c0_i32, %c0_i32_0 : i32, i32
  }
  func.func @transform_12(%arg0: i32) -> (i32, i32) {
    %c0_i32 = arith.constant 0 : i32
    %c0_i32_0 = arith.constant 0 : i32
    %c0_i32_1 = arith.constant 0 : i32
    return %c0_i32, %c0_i32_0 : i32, i32
  }
  func.func @transform_13(%arg0: i32) -> (i32, i32) {
    %c0_i32 = arith.constant 0 : i32
    %c0_i32_0 = arith.constant 0 : i32
    %c0_i32_1 = arith.constant 0 : i32
    return %c0_i32, %c0_i32_0 : i32, i32
  }
  func.func @transform_14(%arg0: i32) -> (i32, i32) {
    %c0_i32 = arith.constant 0 : i32
    %c0_i32_0 = arith.constant 0 : i32
    %c0_i32_1 = arith.constant 0 : i32
    return %c0_i32, %c0_i32_0 : i32, i32
  }
  func.func @transform_15(%arg0: i32) -> (i32, i32) {
    %c0_i32 = arith.constant 0 : i32
    %c0_i32_0 = arith.constant 0 : i32
    %c0_i32_1 = arith.constant 0 : i32
    return %c0_i32, %c0_i32_0 : i32, i32
  }
  func.func @transform_16(%arg0: i32) -> (i32, i32) {
    %c0_i32 = arith.constant 0 : i32
    %c0_i32_0 = arith.constant 0 : i32
    %c0_i32_1 = arith.constant 0 : i32
    return %c0_i32, %c0_i32_0 : i32, i32
  }
  func.func @transform_17(%arg0: i32) -> (i32, i32, i32) {
    %c0_i32 = arith.constant 0 : i32
    %c0_i32_0 = arith.constant 0 : i32
    %c0_i32_1 = arith.constant 0 : i32
    return %arg0, %c0_i32, %c0_i32_0 : i32, i32, i32
  }
}

</mosaic_0001>

<bundles_post_ra>
// kernel: tpu_custom_call.1
= control target key start
LH: loop header
LB: loop body
LE: loop exit
PB: predicated region body
PF: predicated region fallthrough
CT: control target
= control target key end

     0   :  { %s4608_s0 = inlined_call_operand.hbm [shape: f32[2,8,32], index: 0, kind: input, shape index: {}]   ;;  %s4609_s1 = inlined_call_operand.hbm [shape: f32[2,8,32], index: 1, kind: input, shape index: {}]   ;;  %s4610_s2 = inlined_call_operand.hbm [shape: bf16[32,96], index: 2, kind: input, shape index: {}]   ;;  %s4611_s3 = inlined_call_operand.hbm [shape: bf16[32,32], index: 3, kind: input, shape index: {}]   ;;  %s4612_s4 = inlined_call_operand.hbm [shape: f32[1,32], index: 4, kind: input, shape index: {}]   ;;  %s4613_s5 = inlined_call_operand.hbm [shape: f32[1,32], index: 5, kind: input, shape index: {}]   ;;  %s4614_s6 = inlined_call_operand.hbm [shape: bf16[32,32], index: 6, kind: input, shape index: {}]   ;;  %s4615_s7 = inlined_call_operand.hbm [shape: bf16[32,64], index: 7, kind: input, shape index: {}]   ;;  %s4616_s8 = inlined_call_operand.hbm [shape: bf16[32,32], index: 8, kind: input, shape index: {}]   ;;  %s4617_s9 = inlined_call_operand.hbm [shape: f32[1,32], index: 9, kind: input, shape index: {}]   ;;  %s4618_s10 = inlined_call_operand.hbm [shape: f32[1,32], index: 10, kind: input, shape index: {}]   ;;  %s4619_s11 = inlined_call_operand.hbm [shape: bf16[32,64], index: 11, kind: input, shape index: {}]   ;;  %s4620_s12 = inlined_call_operand.hbm [shape: f32[1,64], index: 12, kind: input, shape index: {}]   ;;  %s4621_s13 = inlined_call_operand.hbm [shape: bf16[64,32], index: 13, kind: input, shape index: {}]   ;;  %s4622_s14 = inlined_call_operand.hbm [shape: f32[1,32], index: 14, kind: input, shape index: {}]   ;;  %s4623_s15 = inlined_call_operand.hbm [shape: f32[1,32], index: 15, kind: input, shape index: {}]   ;;  %s4624_s16 = inlined_call_operand.hbm [shape: f32[1,32], index: 16, kind: input, shape index: {}]   ;;  %s4625_s17 = inlined_call_operand.hbm [shape: f32[2,8,32], index: 17, kind: output, shape index: {}]  }
   0x1   :  { %4645 = sst [smem:[#allocation48_spill]] %s4608_s0 }
   0x2   :  { %4646 = sst [smem:[#allocation49_spill]] %s4609_s1 }
   0x3   :  { %4647 = sst [smem:[#allocation50_spill]] %s4610_s2 }
   0x4   :  { %4648 = sst [smem:[#allocation51_spill]] %s4611_s3 }
   0x5   :  { %4649 = sst [smem:[#allocation52_spill]] %s4612_s4 }
   0x6   :  { %4650 = sst [smem:[#allocation53_spill]] %s4613_s5 }
   0x7   :  { %4651 = sst [smem:[#allocation54_spill]] %s4614_s6 }
   0x8   :  { %4652 = sst [smem:[#allocation55_spill]] %s4615_s7 }
   0x9   :  { %4653 = sst [smem:[#allocation56_spill]] %s4616_s8 }
   0xa   :  { %4654 = sst [smem:[#allocation57_spill]] %s4617_s9 }
   0xb   :  { %4655 = sst [smem:[#allocation58_spill]] %s4625_s17 }
   0xc   :  { %22 = vsyncpa [#allocation4], 0 }
   0xd   :  { %24 = vsyncpa [#allocation4 + $0x1], 0 }
   0xe   :  { %25 = vsyncpa [#allocation7], 0 }
   0xf   :  { %27 = vsyncpa [#allocation7 + $0x1], 0 }
  0x10   :  { %28 = vsyncpa [#allocation10], 0 }
  0x11   :  { %29 = vsyncpa [#allocation13], 0 }
  0x12   :  { %30 = vsyncpa [#allocation16], 0 }
  0x13   :  { %31 = vsyncpa [#allocation19], 0 }
  0x14   :  { %32 = vsyncpa [#allocation22], 0 }
  0x15   :  { %33 = vsyncpa [#allocation25], 0 }
  0x16   :  { %34 = vsyncpa [#allocation28], 0 }
  0x17   :  { %35 = vsyncpa [#allocation5], 0 }
  0x18   :  { %37 = vsyncpa [#allocation5 + $0x1], 0  ;;  %s3846_s24 = smov 0   ;;  %s3848_s25 = smov 0  }
  0x19   :  { %s3850_s26 = smov 0   ;;  %s3852_s27 = smov 0  }
  0x1a LB: > { %4656 = sst [smem:[#allocation42_spill]] %s3706_s24  ;;  %s3720_s28 = smov [#allocation8]   ;;  %s3718_s27 = sphi %s3852_s27, %s4206_s27   ;;  %s3714_s26 = sphi %s3850_s26, %s4716_s26   ;;  %s3710_s25 = sphi %s3848_s25, %s4715_s25   ;;  %s3706_s24 = sphi %s3846_s24, %s4714_s24  }
  0x1b   : > { %4657 = sst [smem:[#allocation43_spill]] %s3710_s25  ;;  %s453_s29 = sshll.u32 %s3720_s28, 4  ;;  %s3872_s29 = int_to_ptr.vmem [resolvable:$true] %s453_s29 }
  0x1c   : > { %4658 = sst [smem:[#allocation44_spill]] %s3714_s26  ;;  %s3867_s0 = sadd.s32 4294967295, %s3718_s27  }
  0x1d   : > { %4659 = sst [smem:[#allocation45_spill]] %s3718_s27  ;;  %p2554_p0 = scmp.ge.s32.totalorder %s3718_s27, 1 }
  0x1e   : > { %4660 = sst [smem:[#allocation46_spill]] %s3867_s0  ;;  %p4639_p1 = scmp.eq.s32.totalorder %s3867_s0, 0 }
  0x1f   : > { %p441_p2 = scmp.lt.s32.totalorder %s3718_s27, 3  ;;  %s3721_s18 = smov [#allocation9]  }
  0x20   : > { %s466_s19 = sshll.u32 %s3721_s18, 4  ;;  %s3722_s20 = smov [#allocation12]   ;;  %s3887_s19 = int_to_ptr.vmem [resolvable:$true] %s466_s19 }
  0x21   : > { %p3874_p3 = pnand %p2554_p0, %p441_p2  ;;  %s491_s21 = sshll.u32 %s3722_s20, 4  ;;  %s3889_s21 = int_to_ptr.vmem [resolvable:$true] %s491_s21 }
  0x22   : > { %s4664_s2 = sld [smem:[#allocation50_spill]] }
  0x23   : > { %s4661_s30 = scalar_select %p3874_p3, 1, 0 }
  0x24   : > { %p2922_p5 = pneg %p3874_p3 }
  0x25   : > { %4662 = sst [smem:[#allocation47_spill]] %s4661_s30 }
  0x26   : > { %p3883_p6 = pnand %p2922_p5, %p4639_p1 }
  0x28   : > { %s3136_s28 = scalar_lea.hbm %s4664_s2, 256  ;;  %p3899_p8 = pneg %p3883_p6 }
  0x29   : > { %p3137_p7 = scmp.ne.s32.totalorder %s4664_s2, %s3136_s28  ;;  %p3143_p11 = scmp.lt.u32.totalorder %s3136_s28, %s4664_s2 }
  0x2b   : > { %p3139_p9 = pnand %p3899_p8, %p3137_p7 }
  0x2d   : > { %p3140_p10 = pneg %p3139_p9 }
  0x2f   : > { %p3145_p12 = pnand %p3143_p11, %p3140_p10 }
  0x31   : > { %3148 = shalt.err (!%p3145_p12)
}
  0x32   : > { %s3149_s17 = scalar_lea.vmem %s3872_s29, 256  ;;  %p3157_p5 = scmp.lt.s32.totalorder %s3872_s29, %s3872_s29 }
  0x33   : > { %p3150_p13 = scmp.ne.s32.totalorder %s3872_s29, %s3149_s17  ;;  %p3158_p4 = scmp.lt.s32.totalorder %s3149_s17, %s3149_s17 }
  0x35   : > { %p3152_p0 = pnand %p3150_p13, %p3899_p8  ;;  %p3159_p7 = por %p3158_p4, %p3157_p5 }
  0x37   : > { %p3153_p2 = pneg %p3152_p0 }
  0x39   : > { %p3160_p9 = pnand %p3159_p7, %p3153_p2 }
  0x3b   : > { %3163 = shalt.err (!%p3160_p9)
}
  0x3c   : > { %s4637_s30 = smov 64   ;;  %s4641_s0 = smov 4  }
  0x3d   : > { %2925 = dma.hbm_to_vmem [thread:$0]  (!%p3883_p6), %s4664_s2, 256, %s3872_s29, [#allocation7], %s4637_s30, %s4637_s30, %s4641_s0  }
  0x3e   : > { %s4666_s3 = sld [smem:[#allocation51_spill]] }
  0x44   : > { %s3164_s17 = scalar_lea.hbm %s4666_s3, 256 }
  0x45   : > { %p3165_p4 = scmp.ne.s32.totalorder %s4666_s3, %s3164_s17  ;;  %p3171_p12 = scmp.lt.u32.totalorder %s3164_s17, %s4666_s3 }
  0x47   : > { %p3167_p10 = pnand %p3165_p4, %p3899_p8 }
  0x49   : > { %p3168_p11 = pneg %p3167_p10 }
  0x4b   : > { %p3173_p13 = pnand %p3171_p12, %p3168_p11 }
  0x4d   : > { %3176 = shalt.err (!%p3173_p13)
}
  0x4e   : > { %s3177_s29 = scalar_lea.vmem %s3887_s19, 256  ;;  %p3185_p7 = scmp.lt.s32.totalorder %s3887_s19, %s3887_s19 }
  0x4f   : > { %p3178_p0 = scmp.ne.s32.totalorder %s3887_s19, %s3177_s29  ;;  %p3186_p9 = scmp.lt.s32.totalorder %s3177_s29, %s3177_s29 }
  0x51   : > { %p3180_p2 = pnand %p3178_p0, %p3899_p8  ;;  %p3187_p4 = por %p3186_p9, %p3185_p7 }
  0x53   : > { %p3181_p5 = pneg %p3180_p2 }
  0x55   : > { %p3188_p10 = pnand %p3187_p4, %p3181_p5 }
  0x57   : > { %3191 = shalt.err (!%p3188_p10)
}
  0x58   : > { %2928 = dma.hbm_to_vmem [thread:$0]  (!%p3883_p6), %s4666_s3, 256, %s3887_s19, [#allocation10], %s4637_s30, %s4637_s30, %s4641_s0  }
  0x59   : > { %s4667_s5 = sld [smem:[#allocation53_spill]] }
  0x5f   : > { %s3192_s22 = scalar_lea.hbm %s4667_s5, 16 }
  0x60   : > { %p3193_p11 = scmp.ne.s32.totalorder %s4667_s5, %s3192_s22  ;;  %p3199_p0 = scmp.lt.u32.totalorder %s3192_s22, %s4667_s5 }
  0x62   : > { %p3195_p12 = pnand %p3193_p11, %p3899_p8 }
  0x64   : > { %p3196_p13 = pneg %p3195_p12 }
  0x66   : > { %p3201_p2 = pnand %p3199_p0, %p3196_p13 }
  0x68   : > { %3204 = shalt.err (!%p3201_p2)
}
  0x69   : > { %s3205_s19 = scalar_lea.vmem %s3889_s21, 16  ;;  %s3212_s29 = scalar_lea.vmem %s3889_s21, 32 }
  0x6a   : > { %p3206_p5 = scmp.ne.s32.totalorder %s3889_s21, %s3205_s19  ;;  %p3213_p4 = scmp.lt.s32.totalorder %s3889_s21, %s3889_s21 }
  0x6b   : > { %p3214_p10 = scmp.lt.s32.totalorder %s3212_s29, %s3205_s19 }
  0x6c   : > { %p3208_p7 = pnand %p3206_p5, %p3899_p8 }
  0x6d   : > { %p3215_p11 = por %p3214_p10, %p3213_p4 }
  0x6e   : > { %p3209_p9 = pneg %p3208_p7 }
  0x70   : > { %p3216_p12 = pnand %p3215_p11, %p3209_p9 }
  0x72   : > { %3219 = shalt.err (!%p3216_p12)
}
  0x73   : > { %2934 = dma.hbm_to_vmem [thread:$0]  (!%p3883_p6), %s4667_s5, 16, %s3889_s21, [#allocation13]  }
  0x74   : > { %s3725_s26 = smov [#allocation15]   ;;  %s3726_s22 = smov [#allocation18]  }
  0x75   : > { %s514_s27 = sshll.u32 %s3725_s26, 4  ;;  %s541_s23 = sshll.u32 %s3726_s22, 4  ;;  %s515_s27 = int_to_ptr.vmem [resolvable:$true] %s514_s27  ;;  %s542_s23 = int_to_ptr.vmem [resolvable:$true] %s541_s23 }
  0x76   : > { %s4668_s7 = sld [smem:[#allocation55_spill]] }
  0x7c   : > { %s3220_s17 = scalar_lea.hbm %s4668_s7, 256 }
  0x7d   : > { %p3221_p13 = scmp.ne.s32.totalorder %s4668_s7, %s3220_s17  ;;  %p3227_p5 = scmp.lt.u32.totalorder %s3220_s17, %s4668_s7 }
  0x7f   : > { %p3223_p0 = pnand %p3221_p13, %p3899_p8 }
  0x81   : > { %p3224_p2 = pneg %p3223_p0 }
  0x83   : > { %p3229_p7 = pnand %p3227_p5, %p3224_p2 }
  0x85   : > { %3232 = shalt.err (!%p3229_p7)
}
  0x86   : > { %s3233_s21 = scalar_lea.vmem %s515_s27, 256  ;;  %p3241_p11 = scmp.lt.s32.totalorder %s515_s27, %s515_s27 }
  0x87   : > { %p3234_p9 = scmp.ne.s32.totalorder %s515_s27, %s3233_s21  ;;  %p3242_p12 = scmp.lt.s32.totalorder %s3233_s21, %s3233_s21 }
  0x89   : > { %p3236_p4 = pnand %p3234_p9, %p3899_p8  ;;  %p3243_p1 = por %p3242_p12, %p3241_p11 }
  0x8b   : > { %p3237_p10 = pneg %p3236_p4 }
  0x8d   : > { %p3244_p3 = pnand %p3243_p1, %p3237_p10 }
  0x8f   : > { %3247 = shalt.err (!%p3244_p3)
}
  0x90   : > { %s4669_s25 = smov 64   ;;  %s4670_s9 = sld [smem:[#allocation57_spill]] }
  0x91   : > { %2940 = dma.hbm_to_vmem [thread:$0]  (!%p3883_p6), %s4668_s7, 256, %s515_s27, [#allocation16], %s4669_s25, %s4669_s25, %s4641_s0  }
  0x96   : > { %s3248_s20 = scalar_lea.hbm %s4670_s9, 16 }
  0x97   : > { %p3249_p1 = scmp.ne.s32.totalorder %s4670_s9, %s3248_s20  ;;  %p3255_p0 = scmp.lt.u32.totalorder %s3248_s20, %s4670_s9 }
  0x99   : > { %p3251_p3 = pnand %p3249_p1, %p3899_p8 }
  0x9b   : > { %p3252_p13 = pneg %p3251_p3 }
  0x9d   : > { %p3257_p2 = pnand %p3255_p0, %p3252_p13 }
  0x9f   : > { %3260 = shalt.err (!%p3257_p2)
}
  0xa0   : > { %s3261_s21 = scalar_lea.vmem %s542_s23, 16  ;;  %s3268_s27 = scalar_lea.vmem %s542_s23, 32 }
  0xa1   : > { %p3262_p5 = scmp.ne.s32.totalorder %s542_s23, %s3261_s21  ;;  %p3269_p4 = scmp.lt.s32.totalorder %s542_s23, %s542_s23 }
  0xa2   : > { %p3270_p10 = scmp.lt.s32.totalorder %s3268_s27, %s3261_s21 }
  0xa3   : > { %p3264_p7 = pnand %p3262_p5, %p3899_p8 }
  0xa4   : > { %p3271_p11 = por %p3270_p10, %p3269_p4 }
  0xa5   : > { %p3265_p9 = pneg %p3264_p7 }
  0xa7   : > { %p3272_p12 = pnand %p3271_p11, %p3265_p9 }
  0xa9   : > { %3275 = shalt.err (!%p3272_p12)
}
  0xaa   : > { %2946 = dma.hbm_to_vmem [thread:$0]  (!%p3883_p6), %s4670_s9, 16, %s542_s23, [#allocation19]  }
  0xab   : > { %s3727_s22 = smov [#allocation21]   ;;  %s3728_s20 = smov [#allocation24]  }
  0xac   : > { %s562_s28 = sshll.u32 %s3727_s22, 4  ;;  %s586_s17 = sshll.u32 %s3728_s20, 4  ;;  %s563_s28 = int_to_ptr.vmem [resolvable:$true] %s562_s28  ;;  %s587_s17 = int_to_ptr.vmem [resolvable:$true] %s586_s17 }
  0xad   : > { %s3276_s24 = scalar_lea.hbm %s4619_s11, 256 }
  0xae   : > { %p3277_p1 = scmp.ne.s32.totalorder %s4619_s11, %s3276_s24  ;;  %p3283_p0 = scmp.lt.u32.totalorder %s3276_s24, %s4619_s11 }
  0xb0   : > { %p3279_p3 = pnand %p3277_p1, %p3899_p8 }
  0xb2   : > { %p3280_p13 = pneg %p3279_p3 }
  0xb4   : > { %p3285_p2 = pnand %p3283_p0, %p3280_p13 }
  0xb6   : > { %3288 = shalt.err (!%p3285_p2)
}
  0xb7   : > { %s3289_s23 = scalar_lea.vmem %s563_s28, 256  ;;  %p3297_p4 = scmp.lt.s32.totalorder %s563_s28, %s563_s28 }
  0xb8   : > { %p3290_p5 = scmp.ne.s32.totalorder %s563_s28, %s3289_s23  ;;  %p3298_p10 = scmp.lt.s32.totalorder %s3289_s23, %s3289_s23 }
  0xba   : > { %p3292_p7 = pnand %p3290_p5, %p3899_p8  ;;  %p3299_p11 = por %p3298_p10, %p3297_p4 }
  0xbc   : > { %p3293_p9 = pneg %p3292_p7 }
  0xbe   : > { %p3300_p12 = pnand %p3299_p11, %p3293_p9 }
  0xc0   : > { %3303 = shalt.err (!%p3300_p12)
}
  0xc1   : > { %s4671_s26 = smov 4   ;;  %s3304_s29 = scalar_lea.hbm %s4621_s13, 512 }
  0xc2   : > { %2952 = dma.hbm_to_vmem [thread:$0]  (!%p3883_p6), %s4619_s11, 256, %s563_s28, [#allocation22], %s4669_s25, %s4669_s25, %s4671_s26  }
  0xc3   : > { %p3305_p1 = scmp.ne.s32.totalorder %s4621_s13, %s3304_s29  ;;  %p3311_p0 = scmp.lt.u32.totalorder %s3304_s29, %s4621_s13 }
  0xc5   : > { %p3307_p3 = pnand %p3305_p1, %p3899_p8 }
  0xc7   : > { %p3308_p13 = pneg %p3307_p3 }
  0xc9   : > { %p3313_p2 = pnand %p3311_p0, %p3308_p13 }
  0xcb   : > { %3316 = shalt.err (!%p3313_p2)
}
  0xcc   : > { %s3317_s23 = scalar_lea.vmem %s587_s17, 512  ;;  %p3325_p4 = scmp.lt.s32.totalorder %s587_s17, %s587_s17 }
  0xcd   : > { %p3318_p5 = scmp.ne.s32.totalorder %s587_s17, %s3317_s23  ;;  %p3326_p10 = scmp.lt.s32.totalorder %s3317_s23, %s3317_s23 }
  0xcf   : > { %p3320_p7 = pnand %p3318_p5, %p3899_p8  ;;  %p3327_p11 = por %p3326_p10, %p3325_p4 }
  0xd1   : > { %p3321_p9 = pneg %p3320_p7 }
  0xd3   : > { %p3328_p12 = pnand %p3327_p11, %p3321_p9 }
  0xd5   : > { %3331 = shalt.err (!%p3328_p12)
}
  0xd6   : > { %2958 = dma.hbm_to_vmem [thread:$0]  (!%p3883_p6), %s4621_s13, 512, %s587_s17, [#allocation25], %s4669_s25, %s4669_s25, %s4671_s26  }
  0xd7   : > { %s3729_s22 = smov [#allocation27]   ;;  %s3730_s19 = smov [#allocation11]  }
  0xd8   : > { %s611_s20 = sshll.u32 %s3729_s22, 4  ;;  %s480_s29 = sshll.u32 %s3730_s19, 4  ;;  %s612_s20 = int_to_ptr.vmem [resolvable:$true] %s611_s20  ;;  %s481_s29 = int_to_ptr.vmem [resolvable:$true] %s480_s29 }
  0xd9   : > { %s3332_s27 = scalar_lea.hbm %s4623_s15, 16 }
  0xda   : > { %p3333_p1 = scmp.ne.s32.totalorder %s4623_s15, %s3332_s27  ;;  %p3339_p0 = scmp.lt.u32.totalorder %s3332_s27, %s4623_s15 }
  0xdc   : > { %p3335_p3 = pnand %p3333_p1, %p3899_p8 }
  0xde   : > { %p3336_p13 = pneg %p3335_p3 }
  0xe0   : > { %p3341_p2 = pnand %p3339_p0, %p3336_p13 }
  0xe2   : > { %3344 = shalt.err (!%p3341_p2)
}
  0xe3   : > { %s3345_s17 = scalar_lea.vmem %s612_s20, 16  ;;  %s3352_s0 = scalar_lea.vmem %s612_s20, 32 }
  0xe4   : > { %p3346_p5 = scmp.ne.s32.totalorder %s612_s20, %s3345_s17  ;;  %p3353_p4 = scmp.lt.s32.totalorder %s612_s20, %s612_s20 }
  0xe5   : > { %p3354_p10 = scmp.lt.s32.totalorder %s3352_s0, %s3345_s17 }
  0xe6   : > { %p3348_p7 = pnand %p3346_p5, %p3899_p8 }
  0xe7   : > { %p3355_p11 = por %p3354_p10, %p3353_p4 }
  0xe8   : > { %p3349_p9 = pneg %p3348_p7 }
  0xea   : > { %p3356_p12 = pnand %p3355_p11, %p3349_p9 }
  0xec   : > { %3359 = shalt.err (!%p3356_p12)
}
  0xed   : > { %2964 = dma.hbm_to_vmem [thread:$0]  (!%p3883_p6), %s4623_s15, 16, %s612_s20, [#allocation28]  }
  0xee   : > { %s4672_s4 = sld [smem:[#allocation52_spill]] }
  0xf4   : > { %s3360_s21 = scalar_lea.hbm %s4672_s4, 16 }
  0xf5   : > { %p3361_p1 = scmp.ne.s32.totalorder %s4672_s4, %s3360_s21  ;;  %p3367_p0 = scmp.lt.u32.totalorder %s3360_s21, %s4672_s4 }
  0xf7   : > { %p3363_p3 = pnand %p3361_p1, %p3899_p8 }
  0xf9   : > { %p3364_p13 = pneg %p3363_p3 }
  0xfb   : > { %p3369_p2 = pnand %p3367_p0, %p3364_p13 }
  0xfd   : > { %3372 = shalt.err (!%p3369_p2)
}
  0xfe   : > { %s3373_s17 = scalar_lea.vmem %s481_s29, 16  ;;  %s3380_s20 = scalar_lea.vmem %s481_s29, 32 }
  0xff   : > { %p3374_p5 = scmp.ne.s32.totalorder %s481_s29, %s3373_s17  ;;  %p3381_p4 = scmp.lt.s32.totalorder %s481_s29, %s481_s29 }
 0x100   : > { %p3382_p10 = scmp.lt.s32.totalorder %s3380_s20, %s3373_s17 }
 0x101   : > { %p3376_p7 = pnand %p3374_p5, %p3899_p8 }
 0x102   : > { %p3383_p11 = por %p3382_p10, %p3381_p4 }
 0x103   : > { %p3377_p9 = pneg %p3376_p7 }
 0x105   : > { %p3384_p12 = pnand %p3383_p11, %p3377_p9 }
 0x107   : > { %3387 = shalt.err (!%p3384_p12)
}
 0x108   : > { %2931 = dma.hbm_to_vmem [thread:$0]  (!%p3883_p6), %s4672_s4, 16, %s481_s29, [#allocation10]  }
 0x109   : > { %s3731_s19 = smov [#allocation14]   ;;  %s3732_s24 = smov [#allocation17]  }
 0x10a   : > { %s501_s2 = sshll.u32 %s3731_s19, 4  ;;  %s527_s21 = sshll.u32 %s3732_s24, 4  ;;  %s502_s2 = int_to_ptr.vmem [resolvable:$true] %s501_s2  ;;  %s528_s21 = int_to_ptr.vmem [resolvable:$true] %s527_s21 }
 0x10b   : > { %s4673_s6 = sld [smem:[#allocation54_spill]] }
 0x111   : > { %s3388_s23 = scalar_lea.hbm %s4673_s6, 256 }
 0x112   : > { %p3389_p1 = scmp.ne.s32.totalorder %s4673_s6, %s3388_s23  ;;  %p3395_p0 = scmp.lt.u32.totalorder %s3388_s23, %s4673_s6 }
 0x114   : > { %p3391_p3 = pnand %p3389_p1, %p3899_p8 }
 0x116   : > { %p3392_p13 = pneg %p3391_p3 }
 0x118   : > { %p3397_p2 = pnand %p3395_p0, %p3392_p13 }
 0x11a   : > { %3400 = shalt.err (!%p3397_p2)
}
 0x11b   : > { %s3401_s29 = scalar_lea.vmem %s502_s2, 256  ;;  %p3409_p4 = scmp.lt.s32.totalorder %s502_s2, %s502_s2 }
 0x11c   : > { %p3402_p5 = scmp.ne.s32.totalorder %s502_s2, %s3401_s29  ;;  %p3410_p10 = scmp.lt.s32.totalorder %s3401_s29, %s3401_s29 }
 0x11e   : > { %p3404_p7 = pnand %p3402_p5, %p3899_p8  ;;  %p3411_p11 = por %p3410_p10, %p3409_p4 }
 0x120   : > { %p3405_p9 = pneg %p3404_p7 }
 0x122   : > { %p3412_p12 = pnand %p3411_p11, %p3405_p9 }
 0x124   : > { %3415 = shalt.err (!%p3412_p12)
}
 0x125   : > { %2937 = dma.hbm_to_vmem [thread:$0]  (!%p3883_p6), %s4673_s6, 256, %s502_s2, [#allocation13], %s4669_s25, %s4669_s25, %s4671_s26  }
 0x126   : > { %s4674_s8 = sld [smem:[#allocation56_spill]] }
 0x12c   : > { %s3416_s30 = scalar_lea.hbm %s4674_s8, 256 }
 0x12d   : > { %p3417_p1 = scmp.ne.s32.totalorder %s4674_s8, %s3416_s30  ;;  %p3423_p0 = scmp.lt.u32.totalorder %s3416_s30, %s4674_s8 }
 0x12f   : > { %p3419_p3 = pnand %p3417_p1, %p3899_p8 }
 0x131   : > { %p3420_p13 = pneg %p3419_p3 }
 0x133   : > { %p3425_p2 = pnand %p3423_p0, %p3420_p13 }
 0x135   : > { %3428 = shalt.err (!%p3425_p2)
}
 0x136   : > { %s3429_s0 = scalar_lea.vmem %s528_s21, 256  ;;  %p3437_p4 = scmp.lt.s32.totalorder %s528_s21, %s528_s21 }
 0x137   : > { %p3430_p5 = scmp.ne.s32.totalorder %s528_s21, %s3429_s0  ;;  %p3438_p10 = scmp.lt.s32.totalorder %s3429_s0, %s3429_s0 }
 0x139   : > { %p3432_p7 = pnand %p3430_p5, %p3899_p8  ;;  %p3439_p11 = por %p3438_p10, %p3437_p4 }
 0x13b   : > { %p3433_p9 = pneg %p3432_p7 }
 0x13d   : > { %p3440_p12 = pnand %p3439_p11, %p3433_p9 }
 0x13f   : > { %3443 = shalt.err (!%p3440_p12)
}
 0x140   : > { %2943 = dma.hbm_to_vmem [thread:$0]  (!%p3883_p6), %s4674_s8, 256, %s528_s21, [#allocation16], %s4669_s25, %s4669_s25, %s4671_s26  }
 0x141   : > { %s3733_s22 = smov [#allocation20]   ;;  %s3734_s24 = smov [#allocation23]  }
 0x142   : > { %s552_s19 = sshll.u32 %s3733_s22, 4  ;;  %s576_s27 = sshll.u32 %s3734_s24, 4  ;;  %s553_s19 = int_to_ptr.vmem [resolvable:$true] %s552_s19  ;;  %s577_s27 = int_to_ptr.vmem [resolvable:$true] %s576_s27 }
 0x143   : > { %s3444_s28 = scalar_lea.hbm %s4618_s10, 16 }
 0x144   : > { %p3445_p1 = scmp.ne.s32.totalorder %s4618_s10, %s3444_s28  ;;  %p3451_p0 = scmp.lt.u32.totalorder %s3444_s28, %s4618_s10 }
 0x146   : > { %p3447_p3 = pnand %p3445_p1, %p3899_p8 }
 0x148   : > { %p3448_p13 = pneg %p3447_p3 }
 0x14a   : > { %p3453_p2 = pnand %p3451_p0, %p3448_p13 }
 0x14c   : > { %3456 = shalt.err (!%p3453_p2)
}
 0x14d   : > { %s3457_s25 = scalar_lea.vmem %s553_s19, 16  ;;  %s3464_s26 = scalar_lea.vmem %s553_s19, 32 }
 0x14e   : > { %p3458_p5 = scmp.ne.s32.totalorder %s553_s19, %s3457_s25  ;;  %p3465_p4 = scmp.lt.s32.totalorder %s553_s19, %s553_s19 }
 0x14f   : > { %p3466_p10 = scmp.lt.s32.totalorder %s3464_s26, %s3457_s25 }
 0x150   : > { %p3460_p7 = pnand %p3458_p5, %p3899_p8 }
 0x151   : > { %p3467_p11 = por %p3466_p10, %p3465_p4 }
 0x152   : > { %p3461_p9 = pneg %p3460_p7 }
 0x154   : > { %p3468_p12 = pnand %p3467_p11, %p3461_p9 }
 0x156   : > { %3471 = shalt.err (!%p3468_p12)
}
 0x157   : > { %2949 = dma.hbm_to_vmem [thread:$0]  (!%p3883_p6), %s4618_s10, 16, %s553_s19, [#allocation19]  }
 0x158   : > { %s3472_s30 = scalar_lea.hbm %s4620_s12, 16 }
 0x159   : > { %p3473_p1 = scmp.ne.s32.totalorder %s4620_s12, %s3472_s30  ;;  %p3479_p0 = scmp.lt.u32.totalorder %s3472_s30, %s4620_s12 }
 0x15b   : > { %p3475_p3 = pnand %p3473_p1, %p3899_p8 }
 0x15d   : > { %p3476_p13 = pneg %p3475_p3 }
 0x15f   : > { %p3481_p2 = pnand %p3479_p0, %p3476_p13 }
 0x161   : > { %3484 = shalt.err (!%p3481_p2)
}
 0x162   : > { %s3485_s0 = scalar_lea.vmem %s577_s27, 16  ;;  %s3492_s19 = scalar_lea.vmem %s577_s27, 32 }
 0x163   : > { %p3486_p5 = scmp.ne.s32.totalorder %s577_s27, %s3485_s0  ;;  %p3493_p4 = scmp.lt.s32.totalorder %s577_s27, %s577_s27 }
 0x164   : > { %p3494_p10 = scmp.lt.s32.totalorder %s3492_s19, %s3485_s0 }
 0x165   : > { %p3488_p7 = pnand %p3486_p5, %p3899_p8 }
 0x166   : > { %p3495_p11 = por %p3494_p10, %p3493_p4 }
 0x167   : > { %p3489_p9 = pneg %p3488_p7 }
 0x169   : > { %p3496_p12 = pnand %p3495_p11, %p3489_p9 }
 0x16b   : > { %3499 = shalt.err (!%p3496_p12)
}
 0x16c   : > { %2955 = dma.hbm_to_vmem [thread:$0]  (!%p3883_p6), %s4620_s12, 16, %s577_s27, [#allocation22]  }
 0x16d   : > { %s3735_s26 = smov [#allocation26]   ;;  %s3736_s29 = smov [#allocation29]  }
 0x16e   : > { %s600_s21 = sshll.u32 %s3735_s26, 4  ;;  %s622_s22 = sshll.u32 %s3736_s29, 4  ;;  %s601_s21 = int_to_ptr.vmem [resolvable:$true] %s600_s21  ;;  %s623_s22 = int_to_ptr.vmem [resolvable:$true] %s622_s22 }
 0x16f   : > { %s3500_s23 = scalar_lea.hbm %s4622_s14, 16 }
 0x170   : > { %p3501_p1 = scmp.ne.s32.totalorder %s4622_s14, %s3500_s23  ;;  %p3507_p0 = scmp.lt.u32.totalorder %s3500_s23, %s4622_s14 }
 0x172   : > { %p3503_p3 = pnand %p3501_p1, %p3899_p8 }
 0x174   : > { %p3504_p13 = pneg %p3503_p3 }
 0x176   : > { %p3509_p2 = pnand %p3507_p0, %p3504_p13 }
 0x178   : > { %3512 = shalt.err (!%p3509_p2)
}
 0x179   : > { %s3513_s27 = scalar_lea.vmem %s601_s21, 16  ;;  %s3520_s19 = scalar_lea.vmem %s601_s21, 32 }
 0x17a   : > { %p3514_p5 = scmp.ne.s32.totalorder %s601_s21, %s3513_s27  ;;  %p3521_p4 = scmp.lt.s32.totalorder %s601_s21, %s601_s21 }
 0x17b   : > { %p3522_p10 = scmp.lt.s32.totalorder %s3520_s19, %s3513_s27 }
 0x17c   : > { %p3516_p7 = pnand %p3514_p5, %p3899_p8 }
 0x17d   : > { %p3523_p11 = por %p3522_p10, %p3521_p4 }
 0x17e   : > { %p3517_p9 = pneg %p3516_p7 }
 0x180   : > { %p3524_p12 = pnand %p3523_p11, %p3517_p9 }
 0x182   : > { %3527 = shalt.err (!%p3524_p12)
}
 0x183   : > { %2961 = dma.hbm_to_vmem [thread:$0]  (!%p3883_p6), %s4622_s14, 16, %s601_s21, [#allocation25]  }
 0x184   : > { %s3528_s24 = scalar_lea.hbm %s4624_s16, 16 }
 0x185   : > { %p3529_p1 = scmp.ne.s32.totalorder %s4624_s16, %s3528_s24  ;;  %p3535_p0 = scmp.lt.u32.totalorder %s3528_s24, %s4624_s16 }
 0x187   : > { %p3531_p3 = pnand %p3529_p1, %p3899_p8 }
 0x189   : > { %p3532_p13 = pneg %p3531_p3 }
 0x18b   : > { %p3537_p2 = pnand %p3535_p0, %p3532_p13 }
 0x18d   : > { %3540 = shalt.err (!%p3537_p2)
}
 0x18e   : > { %s3541_s20 = scalar_lea.vmem %s623_s22, 16  ;;  %s3548_s21 = scalar_lea.vmem %s623_s22, 32 }
 0x18f   : > { %p3542_p5 = scmp.ne.s32.totalorder %s623_s22, %s3541_s20  ;;  %p3549_p4 = scmp.lt.s32.totalorder %s623_s22, %s623_s22 }
 0x190   : > { %p3550_p10 = scmp.lt.s32.totalorder %s3548_s21, %s3541_s20 }
 0x191   : > { %p3544_p7 = pnand %p3542_p5, %p3899_p8 }
 0x192   : > { %p3551_p11 = por %p3550_p10, %p3549_p4 }
 0x193   : > { %p3545_p9 = pneg %p3544_p7 }
 0x195   : > { %p3552_p12 = pnand %p3551_p11, %p3545_p9 }
 0x197   : > { %3555 = shalt.err (!%p3552_p12)
}
 0x198   : > { %s4675_s19 = sld [smem:[#allocation45_spill]]  ;;  %s4676_s2 = sld [smem:[#allocation44_spill]] }
 0x199   : > { %s4677_s25 = sld [smem:[#allocation43_spill]]  ;;  %s4678_s18 = sld [smem:[#allocation42_spill]] }
 0x19a   : > { %s4679_s26 = sld [smem:[#allocation46_spill]]  ;;  %s4686_s4 = sld [smem:[#allocation49_spill]] }
 0x19b   : > { %2967 = dma.hbm_to_vmem [thread:$0]  (!%p3883_p6), %s4624_s16, 16, %s623_s22, [#allocation28]  }
 0x19e   : > { %s2553_s29 = sadd.s32 4294967294, %s4675_s19   ;;  %s4206_s27 = sadd.s32 1, %s4675_s19  }
 0x19f   : > { %s50_s1 = sadd.s32 1, %s4676_s2  ;;  %s47_s24 = ssub.s32 %s4675_s19, %s4206_s27 }
 0x1a0   : > { %p57_p8 = scmp.ne.s32.totalorder %s4676_s2, %s4677_s25  ;;  %p48_p1 = scmp.eq.s32.totalorder %s47_s24, 0 }
 0x1a1   : > { %p58_p3 = scmp.eq.s32.totalorder %s4675_s19, 0  ;;  %p63_p13 = scmp.ne.s32.totalorder %s4677_s25, %s4678_s18 }
 0x1a2   : > { %p428_p0 = scmp.eq.s32.totalorder %s4679_s26, 1  ;;  %p4680_p5 = scmp.eq.s32.totalorder %s4679_s26, 0 }
 0x1a3   : > { %s4218_s30 = scalar_select %p48_p1, %s4676_s2, %s50_s1  }
 0x1a4   : > { %p59_p2 = por %p58_p3, %p57_p8  ;;  %p4222_p7 = por %p4680_p5, %p63_p13 }
 0x1a5   : > { %p4226_p6 = por %p428_p0, %p57_p8  ;;  %p434_p9 = scmp.eq.s32.totalorder %s2553_s29, 1 }
 0x1a6   : > { %s4681_s23 = scalar_select %p4222_p7, 1, 0 }
 0x1a7   : > { %s4682_s22 = scalar_select %p4226_p6, 1, 0 }
 0x1a8   : > { %p2994_p4 = scmp.lt.s32.totalorder %s4675_s19, 2  ;;  %s633_s28 = sand.u32 1, %s4676_s2  }
 0x1a9   : > { %p4232_p10 = por %p434_p9, %p63_p13  ;;  %s4236_s20 = sshll.u32 %s633_s28, 3 }
 0x1aa   : > { %s2572_s21 = sshll.u32 %s4675_s19, 7  ;;  %s4684_s18 = sld [smem:[#allocation48_spill]] }
 0x1ab   : > { %s4683_s17 = scalar_select %p4232_p10, 1, 0 }
 0x1ac   : > { %s637_s29 = scalar_lea.vmem [#allocation3], %s4236_s20  ;;  %p4245_p11 = pnand %p2994_p4, %p59_p2 }
 0x1ad   : > { %s644_s1 = sshll.u32 %s637_s29, 4  ;;  %s4254_s0 = scalar_lea.hbm %s4686_s4, %s2572_s21  ;;  %s4249_s1 = int_to_ptr.vmem [resolvable:$true] %s644_s1 }
 0x1ae   : > { %s634_s25 = scalar_lea.sflag [#allocation4], %s633_s28  ;;  %p3558_p8 = pneg %p4245_p11 }
 0x1b0   : > { %s4242_s26 = scalar_lea.hbm %s4684_s18, %s2572_s21  ;;  %s3561_s7 = scalar_lea.hbm %s4684_s18, 256 }
 0x1b1   : > { %s3556_s5 = scalar_lea.hbm %s4242_s26, 128  ;;  %p3562_p13 = scmp.lt.u32.totalorder %s4242_s26, %s4684_s18 }
 0x1b2   : > { %p3557_p12 = scmp.ne.s32.totalorder %s4242_s26, %s3556_s5  ;;  %p3563_p0 = scmp.lt.u32.totalorder %s3561_s7, %s3556_s5 }
 0x1b3   : > { %p3565_p5 = scmp.lt.u32.totalorder %s3556_s5, %s4242_s26 }
 0x1b4   : > { %p3559_p1 = pnand %p3558_p8, %p3557_p12  ;;  %p3564_p2 = por %p3563_p0, %p3562_p13 }
 0x1b6   : > { %p3560_p3 = pneg %p3559_p1  ;;  %p3566_p9 = por %p3565_p5, %p3564_p2 }
 0x1b8   : > { %p3567_p4 = pnand %p3566_p9, %p3560_p3 }
 0x1ba   : > { %3570 = shalt.err (!%p3567_p4)
}
 0x1bb   : > { %s3571_s3 = scalar_lea.vmem %s4249_s1, 128  ;;  %s3737_s6 = smov [#allocation3]  }
 0x1bc   : > { %p3572_p12 = scmp.ne.s32.totalorder %s4249_s1, %s3571_s3  ;;  %s3576_s28 = sshll.u32 %s3737_s6, 4  ;;  %s3577_s28 = int_to_ptr.vmem [resolvable:$false] %s3576_s28 }
 0x1bd   : > { %s3578_s8 = scalar_lea.vmem %s3577_s28, 256  ;;  %p3579_p6 = scmp.lt.s32.totalorder %s4249_s1, %s3577_s28 }
 0x1be   : > { %p3574_p1 = pnand %p3572_p12, %p3558_p8  ;;  %p3580_p13 = scmp.lt.s32.totalorder %s3578_s8, %s3571_s3 }
 0x1c0   : > { %p3575_p10 = pneg %p3574_p1  ;;  %p3581_p0 = por %p3580_p13, %p3579_p6 }
 0x1c2   : > { %p3582_p2 = pnand %p3581_p0, %p3575_p10 }
 0x1c4   : > { %3585 = shalt.err (!%p3582_p2)
}
 0x1c5   : > { %2971 = dma.hbm_to_vmem [thread:$0]  (!%p4245_p11), %s4242_s26, 128, %s4249_s1, %s634_s25  }
 0x1c6   : > { %s651_s5 = sand.u32 1, %s4675_s19   ;;  %s655_s7 = scalar_lea.vmem [#allocation6], %s4236_s20 }
 0x1c7   : > { %s662_s9 = sshll.u32 %s655_s7, 4  ;;  %s652_s21 = scalar_lea.sflag [#allocation7], %s651_s5  ;;  %s663_s9 = int_to_ptr.vmem [resolvable:$true] %s662_s9 }
 0x1c8   : > { %s3586_s24 = scalar_lea.hbm %s4254_s0, 128  ;;  %s3591_s6 = scalar_lea.hbm %s4686_s4, 256 }
 0x1c9   : > { %p3587_p6 = scmp.ne.s32.totalorder %s4254_s0, %s3586_s24  ;;  %p3592_p5 = scmp.lt.u32.totalorder %s4254_s0, %s4686_s4 }
 0x1ca   : > { %p3593_p9 = scmp.lt.u32.totalorder %s3591_s6, %s3586_s24  ;;  %p3595_p12 = scmp.lt.u32.totalorder %s3586_s24, %s4254_s0 }
 0x1cb   : > { %p3589_p10 = pnand %p3587_p6, %p3558_p8 }
 0x1cc   : > { %p3594_p4 = por %p3593_p9, %p3592_p5 }
 0x1cd   : > { %p3590_p3 = pneg %p3589_p10 }
 0x1ce   : > { %p3596_p1 = por %p3595_p12, %p3594_p4 }
 0x1d0   : > { %p3597_p13 = pnand %p3596_p1, %p3590_p3 }
 0x1d2   : > { %3600 = shalt.err (!%p3597_p13)
}
 0x1d3   : > { %s3601_s19 = scalar_lea.vmem %s663_s9, 128  ;;  %s3738_s20 = smov [#allocation6]  }
 0x1d4   : > { %p3602_p0 = scmp.ne.s32.totalorder %s663_s9, %s3601_s19  ;;  %s3606_s26 = sshll.u32 %s3738_s20, 4  ;;  %s3607_s26 = int_to_ptr.vmem [resolvable:$false] %s3606_s26 }
 0x1d5   : > { %s3608_s1 = scalar_lea.vmem %s3607_s26, 256  ;;  %p3609_p10 = scmp.lt.s32.totalorder %s663_s9, %s3607_s26 }
 0x1d6   : > { %p3604_p2 = pnand %p3602_p0, %p3558_p8  ;;  %p3610_p7 = scmp.lt.s32.totalorder %s3608_s1, %s3601_s19 }
 0x1d8   : > { %p3605_p6 = pneg %p3604_p2  ;;  %p3611_p5 = por %p3610_p7, %p3609_p10 }
 0x1da   : > { %p3612_p9 = pnand %p3611_p5, %p3605_p6 }
 0x1dc   : > { %3615 = shalt.err (!%p3612_p9)
}
 0x1dd   : > { %2974 = dma.hbm_to_vmem [thread:$0]  (!%p4245_p11), %s4254_s0, 128, %s663_s9, %s652_s21  }
 0x1de   : > { %s4687_s25 = sld [smem:[#allocation47_spill]] }
 0x1e4   : > { %p4688_p3 = scmp.ne.s32.totalorder %s4687_s25, 0 }
 0x1e5   : > { %s4689_s5 = sld [smem:[#allocation43_spill]] (!%p4688_p3)  ;;  %p4690_p7 = scmp.ne.s32.totalorder (!%p4688_p3), %s4681_s23, 0 }
 0x1e6   : > { %671 = sbr.rel (%p4688_p3) target bundleno = 4890 (0x131a), region = 88 }
 0x1eb   : > { %s4305_s7 = sand.u32 (!%p4688_p3), 1, %s4689_s5  }
 0x1ec   : > { %s4308_s24 = sshll.u32 (!%p4688_p3), %s4305_s7, 3  ;;  %s674_s29 = scalar_lea.sflag (!%p4688_p3), [#allocation4], %s4305_s7 }
 0x1ed   : > { %s677_s3 = scalar_lea.vmem [#allocation3], %s4308_s24 }
 0x1ee   : > { %3661 = dma.done.wait (%p4690_p7), %s674_s29, 128  }
 0x1ef   : > { %3663 = vsyncadd (%p4690_p7), %s674_s29, 4294967168  ;;  %s4691_s2 = sld [smem:[#allocation46_spill]]  ;;  %s686_s21 = scalar_lea.vmem [#allocation6], %s4308_s24 }
 0x1f5   : > { %s682_s0 = sand.u32 1, %s4691_s2  }
 0x1f6   : > { %s683_s9 = scalar_lea.sflag [#allocation7], %s682_s0 }
 0x1f7   : > { %3665 = dma.done.wait (%p4690_p7), %s683_s9, 128  }
 0x1f8   : > { %3667 = vsyncadd (%p4690_p7), %s683_s9, 4294967168  ;;  %p4692_p11 = scmp.eq.s32.totalorder %s4691_s2, 0 }
 0x1fa   : > { %3669 = dma.done.wait (%p4692_p11), [#allocation7], 256   ;;  %p4693_p8 = pmov %p4692_p11 }
 0x1fc   : > { %3671 = vsyncadd (%p4693_p8), [#allocation7], 4294967040  ;;  %p4694_p4 = pmov %p4693_p8 }
 0x1fe   : > { %3673 = dma.done.wait (%p4694_p4), [#allocation10], 272   ;;  %p4695_p12 = pmov %p4694_p4 }
 0x1ff   : > { %p4696_p1 = pmov %p4694_p4 }
 0x200   : > { %3675 = vsyncadd (%p4695_p12), [#allocation10], 4294967024 }
 0x201   : > { %3677 = dma.done.wait (%p4696_p1), [#allocation13], 272   ;;  %p4697_p13 = pmov %p4696_p1 }
 0x202   : > { %p4698_p0 = pmov %p4696_p1 }
 0x203   : > { %3679 = vsyncadd (%p4697_p13), [#allocation13], 4294967024 }
 0x204   : > { %3681 = dma.done.wait (%p4698_p0), [#allocation16], 512   ;;  %p4699_p2 = pmov %p4698_p0 }
 0x205   : > { %p4700_p6 = pmov %p4698_p0 }
 0x206   : > { %3683 = vsyncadd (%p4699_p2), [#allocation16], 4294966784 }
 0x207   : > { %3685 = dma.done.wait (%p4700_p6), [#allocation19], 32   ;;  %p4701_p10 = pmov %p4698_p0 }
 0x208   : > { %p4702_p5 = pmov %p4698_p0 }
 0x209   : > { %3687 = vsyncadd (%p4701_p10), [#allocation19], 4294967264 }
 0x20a   : > { %3689 = dma.done.wait (%p4702_p5), [#allocation22], 272   ;;  %p4703_p9 = pmov %p4698_p0 }
 0x20b   : > { %p4704_p3 = pmov %p4698_p0 }
 0x20c   : > { %3691 = vsyncadd (%p4703_p9), [#allocation22], 4294967024 }
 0x20d   : > { %3693 = dma.done.wait (%p4704_p3), [#allocation25], 528   ;;  %p4705_p7 = pmov %p4698_p0 }
 0x20e   : > { %p4706_p11 = pmov %p4698_p0 }
 0x20f   : > { %3695 = vsyncadd (%p4705_p7), [#allocation25], 4294966768 }
 0x210   : > { %3697 = dma.done.wait (%p4706_p11), [#allocation28], 32   ;;  %p4707_p8 = pmov %p4698_p0 }
 0x211   : > { %v3739_v0 = vmov 0.0   ;;  %vm3740_vm0 = vmmov 0   ;;  %v3076_v1 = vld [vmem:[#allocation8] sm:$0xff]   ;;  %v3077_v2 = vld [vmem:[#allocation8 + $0x8] sm:$0xff]   ;;  %vm823_vm1 = vcmask 261120   ;;  %s3741_s23 = smov 96   ;;  %v870_v23 = vlaneseq }
 0x212   : > { %3699 = vsyncadd (%p4707_p8), [#allocation28], 4294967264  ;;  %2700 = vmatprep.subr.bf16.mxu1 %v3739_v0  ;;  %2704 = vmatprep.mubr.msk.bf16.mxu1 %vm3740_vm0, %v3739_v0  ;;  %v4362_v3 = vld [vmem:[%s677_s3] sm:$0xff]  ;;  %s3742_s6 = smov 120   ;;  %s3743_s28 = smov 88   ;;  %vm879_vm2 = vcmask 64512  }
 0x213   : > { %2714 = vmatprep.subr.bf16.mxu0 %v3739_v0  ;;  %2716 = vmatprep.mubr.msk.bf16.mxu0 %vm3740_vm0, %v3739_v0  ;;  %v805_v4 = vpack.c.bf16 %v4362_v3, %v4362_v3  ;;  %s3744_s8 = smov 80   ;;  %s3745_s19 = smov 112   ;;  %v871_v24 = vshrl.u32 %v870_v23, 7  ;;  %v873_v25 = vand.u32 127, %v870_v23  ;;  %vm944_vm4 = vcmask 1043456  }
 0x214   : > { %2701 = vmatpush3.bf16.msra.mxu1 %v3076_v1  ;;  %s3746_s20 = smov 72   ;;  %s3747_s26 = smov 104   ;;  %vm1105_vm5 = vcmask 130112   ;;  %vm1222_vm6 = vcmask 195712   ;;  %vm1339_vm7 = vcmask 261312   ;;  %vm2222_vm12 = vcmask 523264  }
 0x215   : > { %2702 = vmatprep.subr.bf16.mxu1 %v3739_v0  ;;  %vm874_vm3 = vcmp.gt.s32.totalorder %v873_v25, %v871_v24  ;;  %s3748_s1 = smov 56   ;;  %s3749_s25 = smov 64  }
 0x216   : > { %v875_v26 = vsel %vm874_vm3, 1.7677669e+09, %v3739_v0  ;;  %s3750_s5 = smov 40   ;;  %s3751_s29 = smov 48  }
 0x217   : > { %s3752_s3 = smov 8   ;;  %s3753_s0 = smov 16  }
 0x218   : > { %2703 = vmatpush3.bf16.msra.mxu1 %v3077_v2  ;;  %s3754_s9 = smov 24   ;;  %p4709_p12 = scmp.ne.s32.totalorder %s4682_s22, 0 }
 0x219   : > { %2708 = vmatprep.subr.bf16.mxu1 %v3739_v0 }
 0x21b   : > { %2705 = vmatmul.mubr.msk.bf16.vlgmr.msra.gmra.mrb[0].mxu1 %vm823_vm1, %v805_v4 }
 0x21c   : > { %2710 = vmatprep.mubr.msk.bf16.mxu1 %vm3740_vm0, %v3739_v0 }
 0x2ee   : > { %v861_v5 = vpop.f32.mrb[0].mxu1 }
 0x2ef   : > { %v867_v6 = vmul.f32 0.17677669, %v861_v5  ;;  %v4371_v7 = vpack.c.bf16 %v861_v5, %v861_v5  ;;  %v2706_v8 = vpop.f32.mrb[1].mxu1 }
 0x2f0   : > { %v864_v9 = vpop.f32.mrb[2].mxu1 }
 0x2f1   : > { %v868_v10 = vpack.c.bf16 %v867_v6, %v867_v6  ;;  %877 = vrot.lane.b32.xlu0 %v4371_v7, %s3741_s23  ;;  %v2707_v11 = vpop.f32.mrb[3].mxu1 }
 0x2f3   : > { %990 = vrot.lane.b32.xlu1 %v868_v10, %s3742_s6 }
 0x2f5   : > { %992 = vrot.lane.b32.xlu0 %v4371_v7, %s3743_s28 }
 0x2f7   : > { %1109 = vrot.lane.b32.xlu1 %v4371_v7, %s3744_s8 }
 0x2f9   : > { %1107 = vrot.lane.b32.xlu0 %v868_v10, %s3745_s19 }
 0x2fb   : > { %1226 = vrot.lane.b32.xlu1 %v4371_v7, %s3746_s20 }
 0x2fd   : > { %1224 = vrot.lane.b32.xlu0 %v868_v10, %s3747_s26 }
 0x363   : > { %v878_v12 = vpop.permute.xlu0 %877 }
 0x364   : > { %v884_v13 = vsel %vm879_vm2, %v878_v12, 0 }
 0x365   : > { %2709 = vmatpush3.bf16.xpose.msra.mxu1 %v884_v13  ;;  %v991_v15 = vpop.permute.xlu1 %990 }
 0x366   : > { %2720 = vmatprep.subr.bf16.mxu1 %v3739_v0 }
 0x367   : > { %v993_v14 = vpop.permute.xlu0 %992 }
 0x368   : > { %v998_v16 = vsel %vm879_vm2, %v993_v14, 0 }
 0x369   : > { %v1110_v17 = vpop.permute.xlu1 %1109 }
 0x36a   : > { %v1115_v18 = vsel %vm879_vm2, %v1110_v17, 0 }
 0x36b   : > { %v1108_v20 = vpop.permute.xlu0 %1107 }
 0x36c   : > { %2711 = vmatmul.mubr.msk.bf16.vlgmr.msra.gmra.mrb[4].mxu1 %vm879_vm2, %v868_v10 }
 0x36d   : > { %2721 = vmatpush3.bf16.xpose.msra.mxu1 %v998_v16  ;;  %2722 = vmatprep.mubr.msk.bf16.mxu1 %vm3740_vm0, %v3739_v0  ;;  %v1227_v19 = vpop.permute.xlu1 %1226 }
 0x36e   : > { %2732 = vmatprep.subr.bf16.mxu1 %v3739_v0  ;;  %v1232_v21 = vsel %vm879_vm2, %v1227_v19, 0 }
 0x36f   : > { %v1225_v22 = vpop.permute.xlu0 %1224 }
 0x374   : > { %2723 = vmatmul.mubr.msk.bf16.vlgmr.msra.gmra.mrb[8].mxu1 %vm879_vm2, %v991_v15 }
 0x375   : > { %2733 = vmatpush3.bf16.xpose.msra.mxu1 %v1115_v18  ;;  %2734 = vmatprep.mubr.msk.bf16.mxu1 %vm3740_vm0, %v3739_v0 }
 0x376   : > { %2744 = vmatprep.subr.bf16.mxu1 %v3739_v0 }
 0x37c   : > { %2735 = vmatmul.mubr.msk.bf16.vlgmr.msra.gmra.mrb[12].mxu1 %vm879_vm2, %v1108_v20 }
 0x37d   : > { %2745 = vmatpush3.bf16.xpose.msra.mxu1 %v1232_v21  ;;  %2746 = vmatprep.mubr.msk.bf16.mxu1 %vm3740_vm0, %v3739_v0 }
 0x37e   : > { %2756 = vmatprep.subr.bf16.mxu1 %v3739_v0 }
 0x384   : > { %2747 = vmatmul.mubr.msk.bf16.vlgmr.msra.gmra.mrb[16].mxu1 %vm879_vm2, %v1225_v22 }
 0x385   : > { %2760 = vmatprep.mubr.msk.bf16.mxu1 %vm3740_vm0, %v3739_v0 }
 0x43f   : > { %v920_v27 = vpop.f32.mrb[4].mxu1 }
 0x440   : > { %v926_v28 = vsub.f32 %v920_v27, %v875_v26  ;;  %v2712_v29 = vpop.f32.mrb[5].mxu1 }
 0x441   : > { %v923_v30 = vpop.f32.mrb[6].mxu1 }
 0x442   : > { %v2713_v31 = vpop.f32.mrb[7].mxu1  ;;  %v927_v32 = vsel %vm879_vm2, %v926_v28, -inf }
 0x443   : > { %928 = vmax.xlane.f32.xlu1 %v927_v32 }
 0x447   : > { %v1034_v33 = vpop.f32.mrb[8].mxu1 }
 0x448   : > { %v1040_v34 = vsub.f32 %v1034_v33, %v875_v26  ;;  %v2724_v35 = vpop.f32.mrb[9].mxu1 }
 0x449   : > { %v1037_v36 = vpop.f32.mrb[10].mxu1 }
 0x44a   : > { %v2725_v37 = vpop.f32.mrb[11].mxu1  ;;  %v1041_v38 = vsel %vm879_vm2, %v1040_v34, -inf }
 0x44b   : > { %1042 = vmax.xlane.f32.xlu0 %v1041_v38 }
 0x44f   : > { %v1151_v39 = vpop.f32.mrb[12].mxu1 }
 0x450   : > { %v1157_v40 = vsub.f32 %v1151_v39, %v875_v26  ;;  %v2736_v41 = vpop.f32.mrb[13].mxu1 }
 0x451   : > { %v1154_v42 = vpop.f32.mrb[14].mxu1  ;;  %v3078_v41 = vld [vmem:[#allocation9] sm:$0xff]  }
 0x452   : > { %v2737_v43 = vpop.f32.mrb[15].mxu1  ;;  %v1158_v44 = vsel %vm879_vm2, %v1157_v40, -inf  ;;  %2757 = vmatpush3.bf16.msra.mxu1 %v3078_v41  ;;  %v3079_v42 = vld [vmem:[#allocation9 + $0x8] sm:$0xff]  }
 0x453   : > { %1159 = vmax.xlane.f32.xlu0 %v1158_v44  ;;  %2758 = vmatprep.subr.bf16.mxu1 %v3739_v0 }
 0x456   : > { %2759 = vmatpush3.bf16.msra.mxu1 %v3079_v42 }
 0x457   : > { %v1268_v45 = vpop.f32.mrb[16].mxu1  ;;  %2772 = vmatprep.subr.bf16.mxu1 %v3739_v0 }
 0x458   : > { %v1274_v46 = vsub.f32 %v1268_v45, %v875_v26  ;;  %v2748_v47 = vpop.f32.mrb[17].mxu1 }
 0x459   : > { %v1271_v48 = vpop.f32.mrb[18].mxu1 }
 0x45a   : > { %v2749_v49 = vpop.f32.mrb[19].mxu1  ;;  %v1275_v50 = vsel %vm879_vm2, %v1274_v46, -inf }
 0x45b   : > { %1276 = vmax.xlane.f32.xlu1 %v1275_v50 }
 0x4d0   : > { %v929_v51 = vpop.xlane.xlu1 %928 }
 0x4d1   : > { %v930_v52 = vsub.f32 %v926_v28, %v929_v51 }
 0x4d3   : > { %v931_v53 = vmul.f32 1.442695, %v930_v52 }
 0x4d5   : > { %3092 = vpow2.f32 %v931_v53 }
 0x4d8   : > { %v1043_v54 = vpop.xlane.xlu0 %1042 }
 0x4d9   : > { %v1044_v55 = vsub.f32 %v1040_v34, %v1043_v54 }
 0x4db   : > { %v1045_v56 = vmul.f32 1.442695, %v1044_v55 }
 0x4dd   : > { %3094 = vpow2.f32 %v1045_v56 }
 0x4df   : > { %v3093_v57 = vpop.eup %3092 }
 0x4e0   : > { %v1160_v58 = vpop.xlane.xlu0 %1159  ;;  %v933_v59 = vsel %vm879_vm2, %v3093_v57, 0.0 }
 0x4e1   : > { %v1161_v60 = vsub.f32 %v1157_v40, %v1160_v58  ;;  %934 = vadd.xlane.f32.xlu0 %v933_v59 }
 0x4e3   : > { %v1162_v61 = vmul.f32 1.442695, %v1161_v60 }
 0x4e5   : > { %3096 = vpow2.f32 %v1162_v61 }
 0x4e7   : > { %v3095_v62 = vpop.eup %3094 }
 0x4e8   : > { %v1047_v63 = vsel %vm879_vm2, %v3095_v62, 0.0  ;;  %v1277_v4 = vpop.xlane.xlu1 %1276 }
 0x4e9   : > { %1048 = vadd.xlane.f32.xlu1 %v1047_v63  ;;  %v1278_v5 = vsub.f32 %v1274_v46, %v1277_v4 }
 0x4eb   : > { %v1279_v6 = vmul.f32 1.442695, %v1278_v5  ;;  %v3080_v5 = vld [vmem:[#allocation15] sm:$0xff]  }
 0x4ed   : > { %3098 = vpow2.f32 %v1279_v6  ;;  %v3081_v6 = vld [vmem:[#allocation15 + $0x8] sm:$0xff]  }
 0x4ef   : > { %v3097_v1 = vpop.eup %3096 }
 0x4f0   : > { %v1164_v2 = vsel %vm879_vm2, %v3097_v1, 0.0 }
 0x4f1   : > { %1165 = vadd.xlane.f32.xlu0 %v1164_v2 }
 0x4f7   : > { %v3099_v8 = vpop.eup %3098 }
 0x4f8   : > { %v1281_v9 = vsel %vm879_vm2, %v3099_v8, 0.0 }
 0x4fa   : > { %1053 = vrot.lane.b32.xlu1 %v4371_v7, %s3748_s1 }
 0x507   : > { %939 = vrot.lane.b32.xlu0 %v4371_v7, %s3749_s25 }
 0x50b   : > { %1287 = vrot.lane.b32.xlu0 %v4371_v7, %s3750_s5 }
 0x51e   : > { %1282 = vadd.xlane.f32.xlu1 %v1281_v9 }
 0x52f   : > { %1170 = vrot.lane.b32.xlu1 %v4371_v7, %s3751_s29 }
 0x56e   : > { %v935_v10 = vpop.xlane.xlu0 %934 }
 0x56f   : > { %3100 = vrcp.f32 %v935_v10  ;;  %v3083_v10 = vld [vmem:[#allocation14 + $0x8] sm:$0xff]  }
 0x576   : > { %v1049_v11 = vpop.xlane.xlu1 %1048 }
 0x577   : > { %3102 = vrcp.f32 %v1049_v11 }
 0x579   : > { %v3101_v12 = vpop.eup %3100 }
 0x57a   : > { %v937_v14 = vmul.f32 %v3101_v12, %v3093_v57  ;;  %v1054_v17 = vpop.permute.xlu1 %1053 }
 0x57b   : > { %v1059_v20 = vsel %vm944_vm4, %v1054_v17, 0 }
 0x57c   : > { %v938_v18 = vpack.c.bf16 %v937_v14, %v937_v14 }
 0x57e   : > { %v1166_v13 = vpop.xlane.xlu0 %1165 }
 0x57f   : > { %3104 = vrcp.f32 %v1166_v13 }
 0x581   : > { %v3103_v19 = vpop.eup %3102 }
 0x582   : > { %v940_v15 = vpop.permute.xlu0 %939  ;;  %v1051_v7 = vmul.f32 %v3103_v19, %v3095_v62 }
 0x583   : > { %v946_v16 = vsel %vm944_vm4, %v940_v15, 0 }
 0x584   : > { %2715 = vmatpush3.bf16.msra.mxu0 %v946_v16  ;;  %v1052_v21 = vpack.c.bf16 %v1051_v7, %v1051_v7 }
 0x585   : > { %2726 = vmatprep.subr.bf16.mxu0 %v3739_v0 }
 0x586   : > { %v1288_v27 = vpop.permute.xlu0 %1287 }
 0x587   : > { %2717 = vmatmul.mubr.msk.bf16.vlgmr.msra.gmra.mrb[0].mxu0 %vm879_vm2, %v938_v18  ;;  %v1293_v29 = vsel %vm944_vm4, %v1288_v27, 0 }
 0x588   : > { %2727 = vmatpush3.bf16.msra.mxu0 %v1059_v20  ;;  %2728 = vmatprep.mubr.msk.bf16.mxu0 %vm3740_vm0, %v3739_v0  ;;  %v2608_v20 = vld [vmem:[#allocation11] ss:$0 sm:$0xff] }
 0x589   : > { %2738 = vmatprep.subr.bf16.mxu0 %v3739_v0  ;;  %v3105_v22 = vpop.eup %3104 }
 0x58a   : > { %v1168_v24 = vmul.f32 %v3105_v22, %v3097_v1 }
 0x58c   : > { %v1169_v28 = vpack.c.bf16 %v1168_v24, %v1168_v24 }
 0x58f   : > { %2729 = vmatmul.mubr.msk.bf16.vlgmr.msra.gmra.mrb[4].mxu0 %vm879_vm2, %v1052_v21  ;;  %v2609_v21 = vld [vmem:[#allocation12] ss:$0 sm:$0xff] }
 0x590   : > { %2740 = vmatprep.mubr.msk.bf16.mxu0 %vm3740_vm0, %v3739_v0 }
 0x5ab   : > { %v1283_v23 = vpop.xlane.xlu1 %1282 }
 0x5ac   : > { %3106 = vrcp.f32 %v1283_v23 }
 0x5af   : > { %v1171_v25 = vpop.permute.xlu1 %1170 }
 0x5b0   : > { %v1176_v26 = vsel %vm944_vm4, %v1171_v25, 0 }
 0x5b1   : > { %2739 = vmatpush3.bf16.msra.mxu0 %v1176_v26 }
 0x5b2   : > { %2750 = vmatprep.subr.bf16.mxu0 %v3739_v0 }
 0x5b4   : > { %2741 = vmatmul.mubr.msk.bf16.vlgmr.msra.gmra.mrb[8].mxu0 %vm879_vm2, %v1169_v28 }
 0x5b5   : > { %2751 = vmatpush3.bf16.msra.mxu0 %v1293_v29  ;;  %2752 = vmatprep.mubr.msk.bf16.mxu0 %vm3740_vm0, %v3739_v0 }
 0x5b6   : > { %v3107_v30 = vpop.eup %3106  ;;  %2764 = vmatprep.subr.bf16.mxu0 %v3739_v0 }
 0x5b7   : > { %v1285_v31 = vmul.f32 %v3107_v30, %v3099_v8  ;;  %v3082_v8 = vld [vmem:[#allocation14] sm:$0xff]  }
 0x5b9   : > { %v1286_v32 = vpack.c.bf16 %v1285_v31, %v1285_v31 }
 0x5bc   : > { %2753 = vmatmul.mubr.msk.bf16.vlgmr.msra.gmra.mrb[12].mxu0 %vm879_vm2, %v1286_v32 }
 0x5bd   : > { %2768 = vmatprep.mubr.msk.bf16.mxu0 %vm3740_vm0, %v3739_v0  ;;  %2765 = vmatpush3.bf16.msra.mxu0 %v3082_v8 }
 0x5be   : > { %2766 = vmatprep.subr.bf16.mxu0 %v3739_v0 }
 0x5c1   : > { %2767 = vmatpush3.bf16.msra.mxu0 %v3083_v10 }
 0x5c2   : > { %2780 = vmatprep.subr.bf16.mxu0 %v3739_v0 }
 0x65a   : > { %v982_v33 = vpop.f32.mrb[0].mxu0 }
 0x65b   : > { %988 = vst.msk [vmem:[#allocation2] sm:$0xff] %vm879_vm2, %v982_v33  ;;  %v2718_v34 = vpop.f32.mrb[1].mxu0 }
 0x65c   : > { %v985_v35 = vpop.f32.mrb[2].mxu0 }
 0x65d   : > { %v2719_v36 = vpop.f32.mrb[3].mxu0 }
 0x662   : > { %v1095_v37 = vpop.f32.mrb[4].mxu0 }
 0x663   : > { %1102 = vrot.lane.b32.xlu1 %v1095_v37, %s3752_s3  ;;  %v2730_v38 = vpop.f32.mrb[5].mxu0 }
 0x664   : > { %v1098_v39 = vpop.f32.mrb[6].mxu0 }
 0x665   : > { %v2731_v40 = vpop.f32.mrb[7].mxu0 }
 0x687   : > { %v1212_v43 = vpop.f32.mrb[8].mxu0 }
 0x688   : > { %1219 = vrot.lane.b32.xlu0 %v1212_v43, %s3753_s0  ;;  %v2742_v44 = vpop.f32.mrb[9].mxu0 }
 0x689   : > { %v1215_v45 = vpop.f32.mrb[10].mxu0 }
 0x68a   : > { %v2743_v46 = vpop.f32.mrb[11].mxu0 }
 0x68f   : > { %v1329_v47 = vpop.f32.mrb[12].mxu0 }
 0x690   : > { %1336 = vrot.lane.b32.xlu1 %v1329_v47, %s3754_s9  ;;  %v2754_v48 = vpop.f32.mrb[13].mxu0 }
 0x691   : > { %v1332_v49 = vpop.f32.mrb[14].mxu0 }
 0x692   : > { %v2755_v50 = vpop.f32.mrb[15].mxu0 }
 0x6d5   : > { %v1103_v51 = vpop.permute.xlu1 %1102 }
 0x6d6   : > { %1106 = vst.msk [vmem:[#allocation2] sm:$0xff] %vm1105_vm5, %v1103_v51 }
 0x6fa   : > { %v1220_v52 = vpop.permute.xlu0 %1219 }
 0x6fb   : > { %1223 = vst.msk [vmem:[#allocation2] sm:$0xff] %vm1222_vm6, %v1220_v52 }
 0x702   : > { %v1337_v53 = vpop.permute.xlu1 %1336 }
 0x703   : > { %1340 = vst.msk [vmem:[#allocation2] sm:$0xff] %vm1339_vm7, %v1337_v53 }
 0x70a   : > { %v1341_v54 = vld [vmem:[#allocation2] sm:$0xff] }
 0x70b   : > { %v1342_v55 = vpack.c.bf16 %v1341_v54, %v1341_v54 }
 0x70d   : > { %2761 = vmatmul.mubr.msk.bf16.vlgmr.msra.gmra.mrb[20].mxu1 %vm823_vm1, %v1342_v55 }
 0x70e   : > { %2776 = vmatprep.mubr.msk.bf16.mxu1 %vm3740_vm0, %v3739_v0  ;;  %2773 = vmatpush3.bf16.msra.mxu1 %v3080_v5 }
 0x70f   : > { %2774 = vmatprep.subr.bf16.mxu1 %v3739_v0 }
 0x712   : > { %2775 = vmatpush3.bf16.msra.mxu1 %v3081_v6 }
 0x713   : > { %2786 = vmatprep.subr.bf16.mxu1 %v3739_v0 }
 0x7e0   : > { %v1396_v56 = vpop.f32.mrb[20].mxu1 }
 0x7e1   : > { %v1402_v57 = vadd.f32 %v1396_v56, %v4362_v3  ;;  %v2762_v58 = vpop.f32.mrb[21].mxu1  ;;  %v804_v3 = vld [vmem:[%s686_s21] sm:$0xff]  ;;  %s2642_s21 = sshll.u32 %s4691_s2, 7 }
 0x7e2   : > { %v1399_v59 = vpop.f32.mrb[22].mxu1  ;;  %v806_v9 = vpack.c.bf16 %v804_v3, %v804_v3 }
 0x7e3   : > { %v2763_v60 = vpop.f32.mrb[23].mxu1  ;;  %v1405_v61 = vsel %vm823_vm1, %v1402_v57, 0.0 }
 0x7e4   : > { %1406 = vadd.xlane.f32.xlu0 %v1405_v61  ;;  %2777 = vmatmul.mubr.msk.bf16.vlgmr.msra.gmra.mrb[24].mxu1 %vm823_vm1, %v806_v9 }
 0x7e5   : > { %2788 = vmatprep.mubr.msk.bf16.mxu1 %vm3740_vm0, %v3739_v0 }
 0x871   : > { %v1407_v62 = vpop.xlane.xlu0 %1406 }
 0x872   : > { %v1409_v63 = vmul.f32 0.03125, %v1407_v62 }
 0x874   : > { %v1410_v1 = vsub.f32 %v1402_v57, %v1409_v63 }
 0x876   : > { %v1411_v2 = vmul.f32 %v1410_v1, %v1410_v1 }
 0x878   : > { %v1412_v4 = vsel %vm823_vm1, %v1411_v2, 0.0 }
 0x879   : > { %1413 = vadd.xlane.f32.xlu1 %v1412_v4 }
 0x8b7   : > { %v1553_v25 = vpop.f32.mrb[24].mxu1 }
 0x8b8   : > { %v4468_v26 = vpack.c.bf16 %v1553_v25, %v1553_v25  ;;  %v2778_v27 = vpop.f32.mrb[25].mxu1 }
 0x8b9   : > { %v1556_v28 = vpop.f32.mrb[26].mxu1 }
 0x8ba   : > { %1673 = vrot.lane.b32.xlu0 %v4468_v26, %s3742_s6  ;;  %v2779_v29 = vpop.f32.mrb[27].mxu1  ;;  %v1566_v30 = vsel %vm879_vm2, %v4468_v26, 0 }
 0x8be   : > { %1788 = vrot.lane.b32.xlu0 %v4468_v26, %s3745_s19 }
 0x8c2   : > { %1903 = vrot.lane.b32.xlu0 %v4468_v26, %s3747_s26 }
 0x906   : > { %v1414_v11 = vpop.xlane.xlu1 %1413 }
 0x907   : > { %v1415_v12 = vmul.f32 0.032258064, %v1414_v11 }
 0x909   : > { %3108 = vrsqrt.f32 %v1415_v12  ;;  %vm1418_vm8 = vcmp.eq.f32.partialorder %v1415_v12, inf  ;;  %v1421_v15 = vand.u32 2147483648, %v1415_v12  ;;  %vm1420_vm9 = vcmp.eq.f32.partialorder %v1415_v12, 0.0 }
 0x913   : > { %v3109_v13 = vpop.eup %3108 }
 0x914   : > { %v1417_v14 = vmul.f32 %v3109_v13, %v1415_v12 }
 0x916   : > { %v1419_v16 = vsel %vm1418_vm8, %v1415_v12, %v1417_v14 }
 0x917   : > { %v1422_v17 = vsel %vm1420_vm9, %v1421_v15, %v1419_v16 }
 0x918   : > { %v1423_v18 = vadd.f32 1e-06, %v1422_v17 }
 0x91a   : > { %3110 = vrcp.f32 %v1423_v18 }
 0x924   : > { %v3111_v19 = vpop.eup %3110 }
 0x925   : > { %v1425_v7 = vmul.f32 %v3111_v19, %v1410_v1 }
 0x927   : > { %v1432_v22 = vmul.f32 %v2608_v20, %v1425_v7 }
 0x929   : > { %v4461_v23 = vadd.f32 %v2609_v21, %v1432_v22 }
 0x92b   : > { %v1440_v24 = vpack.c.bf16 %v4461_v23, %v4461_v23 }
 0x92c   : > { %v1674_v35 = vpop.permute.xlu0 %1673 }
 0x92d   : > { %2769 = vmatmul.mubr.msk.bf16.vlgmr.msra.gmra.mrb[16].mxu0 %vm823_vm1, %v1440_v24  ;;  %v1679_v38 = vsel %vm879_vm2, %v1674_v35, 0 }
 0x92e   : > { %2782 = vmatprep.mubr.msk.bf16.mxu0 %vm3740_vm0, %v3739_v0  ;;  %2781 = vmatpush3.bf16.xpose.msra.mxu0 %v1566_v30 }
 0x92f   : > { %2792 = vmatprep.subr.bf16.mxu0 %v3739_v0 }
 0x930   : > { %v1789_v39 = vpop.permute.xlu0 %1788 }
 0x931   : > { %v1794_v41 = vsel %vm879_vm2, %v1789_v39, 0 }
 0x934   : > { %v1904_v42 = vpop.permute.xlu0 %1903 }
 0x935   : > { %v1909_v44 = vsel %vm879_vm2, %v1904_v42, 0 }
 0xa00   : > { %v1494_v31 = vpop.f32.mrb[16].mxu0 }
 0xa01   : > { %v1559_v32 = vmul.f32 0.17677669, %v1494_v31  ;;  %v2770_v33 = vpop.f32.mrb[17].mxu0 }
 0xa02   : > { %v1497_v34 = vpop.f32.mrb[18].mxu0 }
 0xa03   : > { %v1560_v36 = vpack.c.bf16 %v1559_v32, %v1559_v32  ;;  %v2771_v37 = vpop.f32.mrb[19].mxu0 }
 0xa05   : > { %1671 = vrot.lane.b32.xlu1 %v1560_v36, %s3742_s6  ;;  %2783 = vmatmul.mubr.msk.bf16.vlgmr.msra.gmra.mrb[20].mxu0 %vm879_vm2, %v1560_v36 }
 0xa06   : > { %2793 = vmatpush3.bf16.xpose.msra.mxu0 %v1679_v38  ;;  %2794 = vmatprep.mubr.msk.bf16.mxu0 %vm3740_vm0, %v3739_v0 }
 0xa07   : > { %2804 = vmatprep.subr.bf16.mxu0 %v3739_v0 }
 0xa09   : > { %1786 = vrot.lane.b32.xlu1 %v1560_v36, %s3745_s19  ;;  %s4708_s19 = sld [smem:[#allocation58_spill]] }
 0xa0d   : > { %1901 = vrot.lane.b32.xlu1 %v1560_v36, %s3747_s26  ;;  %s2305_s26 = scalar_lea.sflag [#allocation5], %s4305_s7 }
 0xa77   : > { %v1672_v40 = vpop.permute.xlu1 %1671 }
 0xa78   : > { %2795 = vmatmul.mubr.msk.bf16.vlgmr.msra.gmra.mrb[24].mxu0 %vm879_vm2, %v1672_v40 }
 0xa79   : > { %2805 = vmatpush3.bf16.xpose.msra.mxu0 %v1794_v41  ;;  %2806 = vmatprep.mubr.msk.bf16.mxu0 %vm3740_vm0, %v3739_v0 }
 0xa7a   : > { %2816 = vmatprep.subr.bf16.mxu0 %v3739_v0 }
 0xa7b   : > { %v1787_v43 = vpop.permute.xlu1 %1786 }
 0xa7f   : > { %v1902_v45 = vpop.permute.xlu1 %1901 }
 0xa80   : > { %2807 = vmatmul.mubr.msk.bf16.vlgmr.msra.gmra.mrb[28].mxu0 %vm879_vm2, %v1787_v43 }
 0xa81   : > { %2817 = vmatpush3.bf16.xpose.msra.mxu0 %v1909_v44  ;;  %2818 = vmatprep.mubr.msk.bf16.mxu0 %vm3740_vm0, %v3739_v0 }
 0xa82   : > { %2828 = vmatprep.subr.bf16.mxu0 %v3739_v0 }
 0xa88   : > { %2819 = vmatmul.mubr.msk.bf16.vlgmr.msra.gmra.mrb[32].mxu0 %vm879_vm2, %v1902_v45 }
 0xa89   : > { %2832 = vmatprep.mubr.msk.bf16.mxu0 %vm3740_vm0, %v3739_v0 }
 0xad8   : > { %v1602_v46 = vpop.f32.mrb[20].mxu0 }
 0xad9   : > { %v2784_v47 = vpop.f32.mrb[21].mxu0  ;;  %v1608_v48 = vsel %vm879_vm2, %v1602_v46, -inf }
 0xada   : > { %1609 = vmax.xlane.f32.xlu0 %v1608_v48  ;;  %v1605_v49 = vpop.f32.mrb[22].mxu0 }
 0xadb   : > { %v2785_v50 = vpop.f32.mrb[23].mxu0 }
 0xb4b   : > { %v1715_v51 = vpop.f32.mrb[24].mxu0 }
 0xb4c   : > { %v2796_v52 = vpop.f32.mrb[25].mxu0  ;;  %v1721_v53 = vsel %vm879_vm2, %v1715_v51, -inf }
 0xb4d   : > { %1722 = vmax.xlane.f32.xlu1 %v1721_v53  ;;  %v1718_v54 = vpop.f32.mrb[26].mxu0 }
 0xb4e   : > { %v2797_v55 = vpop.f32.mrb[27].mxu0 }
 0xb53   : > { %v1830_v56 = vpop.f32.mrb[28].mxu0 }
 0xb54   : > { %v2808_v57 = vpop.f32.mrb[29].mxu0  ;;  %v1836_v58 = vsel %vm879_vm2, %v1830_v56, -inf }
 0xb55   : > { %1837 = vmax.xlane.f32.xlu0 %v1836_v58  ;;  %v1833_v59 = vpop.f32.mrb[30].mxu0  ;;  %v3085_v57 = vld [vmem:[#allocation17 + $0x8] sm:$0xff]  }
 0xb56   : > { %v2809_v60 = vpop.f32.mrb[31].mxu0 }
 0xb5b   : > { %v1945_v61 = vpop.f32.mrb[32].mxu0 }
 0xb5c   : > { %v2820_v62 = vpop.f32.mrb[33].mxu0  ;;  %v1951_v63 = vsel %vm879_vm2, %v1945_v61, -inf }
 0xb5d   : > { %1952 = vmax.xlane.f32.xlu0 %v1951_v63  ;;  %v1948_v1 = vpop.f32.mrb[34].mxu0 }
 0xb5e   : > { %v2821_v2 = vpop.f32.mrb[35].mxu0 }
 0xb67   : > { %v1610_v4 = vpop.xlane.xlu0 %1609 }
 0xb68   : > { %v1611_v5 = vsub.f32 %v1602_v46, %v1610_v4 }
 0xb6a   : > { %v1612_v6 = vmul.f32 1.442695, %v1611_v5 }
 0xb6c   : > { %3112 = vpow2.f32 %v1612_v6 }
 0xb76   : > { %v3113_v3 = vpop.eup %3112 }
 0xb77   : > { %v1614_v8 = vsel %vm879_vm2, %v3113_v3, 0.0 }
 0xb78   : > { %1615 = vadd.xlane.f32.xlu1 %v1614_v8 }
 0xb89   : > { %1621 = vrot.lane.b32.xlu1 %v4468_v26, %s3741_s23  ;;  %s801_s23 = scalar_lea.vmem [#allocation30], %s4308_s24  ;;  %s3755_s24 = smov [#allocation30]  }
 0xb8a   : > { %s2318_s6 = sshll.u32 %s801_s23, 4  ;;  %s3620_s2 = sshll.u32 %s3755_s24, 4  ;;  %s4565_s6 = int_to_ptr.vmem [resolvable:$true] %s2318_s6  ;;  %s3621_s2 = int_to_ptr.vmem [resolvable:$false] %s3620_s2 }
 0xb8b   : > { %s3616_s1 = scalar_lea.vmem %s4565_s6, 128  ;;  %s3622_s25 = scalar_lea.vmem %s3621_s2, 256 }
 0xb8c   : > { %p3617_p4 = scmp.ne.s32.totalorder %s4565_s6, %s3616_s1  ;;  %p3623_p0 = scmp.lt.s32.totalorder %s4565_s6, %s3621_s2 }
 0xb8d   : > { %p3624_p2 = scmp.lt.s32.totalorder %s3622_s25, %s3616_s1 }
 0xb8e   : > { %p3618_p1 = pnand %p3617_p4, %p4709_p12 }
 0xb8f   : > { %p3625_p6 = por %p3624_p2, %p3623_p0 }
 0xb90   : > { %p3619_p13 = pneg %p3618_p1 }
 0xb92   : > { %p3626_p10 = pnand %p3625_p6, %p3619_p13 }
 0xbda   : > { %v1723_v9 = vpop.xlane.xlu1 %1722 }
 0xbdb   : > { %v1724_v10 = vsub.f32 %v1715_v51, %v1723_v9 }
 0xbdd   : > { %v1725_v11 = vmul.f32 1.442695, %v1724_v10 }
 0xbdf   : > { %3114 = vpow2.f32 %v1725_v11 }
 0xbe2   : > { %v1838_v12 = vpop.xlane.xlu0 %1837 }
 0xbe3   : > { %v1839_v13 = vsub.f32 %v1830_v56, %v1838_v12  ;;  %v3084_v56 = vld [vmem:[#allocation17] sm:$0xff]  }
 0xbe4   : > { %2829 = vmatpush3.bf16.msra.mxu0 %v3084_v56 }
 0xbe5   : > { %v1840_v14 = vmul.f32 1.442695, %v1839_v13  ;;  %2830 = vmatprep.subr.bf16.mxu0 %v3739_v0 }
 0xbe7   : > { %3116 = vpow2.f32 %v1840_v14 }
 0xbe8   : > { %2831 = vmatpush3.bf16.msra.mxu0 %v3085_v57 }
 0xbe9   : > { %v3115_v15 = vpop.eup %3114  ;;  %2844 = vmatprep.subr.bf16.mxu0 %v3739_v0 }
 0xbea   : > { %v1953_v16 = vpop.xlane.xlu0 %1952  ;;  %v1727_v17 = vsel %vm879_vm2, %v3115_v15, 0.0 }
 0xbeb   : > { %v1954_v18 = vsub.f32 %v1945_v61, %v1953_v16  ;;  %1728 = vadd.xlane.f32.xlu0 %v1727_v17 }
 0xbed   : > { %v1955_v19 = vmul.f32 1.442695, %v1954_v18 }
 0xbef   : > { %3118 = vpow2.f32 %v1955_v19 }
 0xbf1   : > { %v3117_v20 = vpop.eup %3116 }
 0xbf2   : > { %v1842_v7 = vsel %vm879_vm2, %v3117_v20, 0.0 }
 0xbf3   : > { %1843 = vadd.xlane.f32.xlu1 %v1842_v7  ;;  %v3087_v7 = vld [vmem:[#allocation21 + $0x8] sm:$0xff]  }
 0xbf9   : > { %v3119_v21 = vpop.eup %3118 }
 0xbfa   : > { %v1957_v22 = vsel %vm879_vm2, %v3119_v21, 0.0 }
 0xbfb   : > { %1958 = vadd.xlane.f32.xlu0 %v1957_v22 }
 0xc04   : > { %1848 = vrot.lane.b32.xlu1 %v4468_v26, %s3744_s8 }
 0xc05   : > { %v1616_v24 = vpop.xlane.xlu1 %1615 }
 0xc06   : > { %3120 = vrcp.f32 %v1616_v24 }
 0xc08   : > { %1963 = vrot.lane.b32.xlu1 %v4468_v26, %s3746_s20  ;;  %s4563_s20 = scalar_lea.hbm %s4708_s19, %s2642_s21 }
 0xc09   : > { %v1622_v25 = vpop.permute.xlu1 %1621 }
 0xc0a   : > { %v1627_v27 = vsel %vm944_vm4, %v1622_v25, 0 }
 0xc0b   : > { %2787 = vmatpush3.bf16.msra.mxu1 %v1627_v27 }
 0xc0c   : > { %2798 = vmatprep.subr.bf16.mxu1 %v3739_v0 }
 0xc10   : > { %v3121_v28 = vpop.eup %3120 }
 0xc11   : > { %v1618_v29 = vmul.f32 %v3121_v28, %v3113_v3  ;;  %1733 = vrot.lane.b32.xlu0 %v4468_v26, %s3743_s28 }
 0xc13   : > { %v1619_v30 = vpack.c.bf16 %v1618_v29, %v1618_v29 }
 0xc15   : > { %2789 = vmatmul.mubr.msk.bf16.vlgmr.msra.gmra.mrb[28].mxu1 %vm879_vm2, %v1619_v30 }
 0xc16   : > { %2800 = vmatprep.mubr.msk.bf16.mxu1 %vm3740_vm0, %v3739_v0 }
 0xc78   : > { %v1729_v31 = vpop.xlane.xlu0 %1728 }
 0xc79   : > { %3122 = vrcp.f32 %v1729_v31 }
 0xc80   : > { %v1844_v32 = vpop.xlane.xlu1 %1843 }
 0xc81   : > { %3124 = vrcp.f32 %v1844_v32 }
 0xc83   : > { %v3123_v33 = vpop.eup %3122 }
 0xc84   : > { %v1731_v35 = vmul.f32 %v3123_v33, %v3115_v15  ;;  %v1849_v38 = vpop.permute.xlu1 %1848  ;;  %v2627_v33 = vld [vmem:[#allocation18] ss:$0 sm:$0xff] }
 0xc85   : > { %v1854_v40 = vsel %vm944_vm4, %v1849_v38, 0 }
 0xc86   : > { %v1732_v26 = vpack.c.bf16 %v1731_v35, %v1731_v35  ;;  %v2628_v35 = vld [vmem:[#allocation20] ss:$0 sm:$0xff] }
 0xc88   : > { %v1959_v34 = vpop.xlane.xlu0 %1958  ;;  %v1964_v42 = vpop.permute.xlu1 %1963 }
 0xc89   : > { %3126 = vrcp.f32 %v1959_v34  ;;  %v1969_v45 = vsel %vm944_vm4, %v1964_v42, 0 }
 0xc8b   : > { %v3125_v39 = vpop.eup %3124 }
 0xc8c   : > { %v1734_v36 = vpop.permute.xlu0 %1733  ;;  %v1846_v41 = vmul.f32 %v3125_v39, %v3117_v20  ;;  %v3086_v20 = vld [vmem:[#allocation21] sm:$0xff]   ;;  %v3091_v39 = vld [vmem:[#allocation24 + $0x18] sm:$0xff]  }
 0xc8d   : > { %v1739_v37 = vsel %vm944_vm4, %v1734_v36, 0 }
 0xc8e   : > { %2799 = vmatpush3.bf16.msra.mxu1 %v1739_v37  ;;  %v1847_v43 = vpack.c.bf16 %v1846_v41, %v1846_v41 }
 0xc8f   : > { %2810 = vmatprep.subr.bf16.mxu1 %v3739_v0 }
 0xc91   : > { %2801 = vmatmul.mubr.msk.bf16.vlgmr.msra.gmra.mrb[32].mxu1 %vm879_vm2, %v1732_v26  ;;  %v3090_v26 = vld [vmem:[#allocation24 + $0x10] sm:$0xff]  }
 0xc92   : > { %2811 = vmatpush3.bf16.msra.mxu1 %v1854_v40  ;;  %2812 = vmatprep.mubr.msk.bf16.mxu1 %vm3740_vm0, %v3739_v0  ;;  %v2629_v40 = vld [vmem:[#allocation23] ss:$0 sm:$0xff] }
 0xc93   : > { %2822 = vmatprep.subr.bf16.mxu1 %v3739_v0  ;;  %v3127_v44 = vpop.eup %3126 }
 0xc94   : > { %v1961_v46 = vmul.f32 %v3127_v44, %v3119_v21  ;;  %v3089_v21 = vld [vmem:[#allocation24 + $0x8] sm:$0xff]  }
 0xc96   : > { %v1962_v47 = vpack.c.bf16 %v1961_v46, %v1961_v46 }
 0xc99   : > { %2813 = vmatmul.mubr.msk.bf16.vlgmr.msra.gmra.mrb[36].mxu1 %vm879_vm2, %v1847_v43 }
 0xc9a   : > { %2823 = vmatpush3.bf16.msra.mxu1 %v1969_v45  ;;  %2824 = vmatprep.mubr.msk.bf16.mxu1 %vm3740_vm0, %v3739_v0 }
 0xc9b   : > { %2836 = vmatprep.subr.bf16.mxu1 %v3739_v0 }
 0xca1   : > { %2825 = vmatmul.mubr.msk.bf16.vlgmr.msra.gmra.mrb[40].mxu1 %vm879_vm2, %v1962_v47 }
 0xca2   : > { %2840 = vmatprep.mubr.msk.bf16.mxu1 %vm3740_vm0, %v3739_v0  ;;  %2837 = vmatpush3.bf16.msra.mxu1 %v3086_v20 }
 0xca3   : > { %2838 = vmatprep.subr.bf16.mxu1 %v3739_v0 }
 0xca6   : > { %2839 = vmatpush3.bf16.msra.mxu1 %v3087_v7 }
 0xce8   : > { %v1663_v48 = vpop.f32.mrb[28].mxu1 }
 0xce9   : > { %1669 = vst.msk [vmem:[#allocation2] sm:$0xff] %vm879_vm2, %v1663_v48  ;;  %v2790_v49 = vpop.f32.mrb[29].mxu1  ;;  %v2633_v48 = vld [vmem:[#allocation26] ss:$0 sm:$0xff] }
 0xcea   : > { %v1666_v50 = vpop.f32.mrb[30].mxu1 }
 0xceb   : > { %v2791_v51 = vpop.f32.mrb[31].mxu1 }
 0xd64   : > { %v1775_v52 = vpop.f32.mrb[32].mxu1 }
 0xd65   : > { %1782 = vrot.lane.b32.xlu0 %v1775_v52, %s3752_s3  ;;  %v2802_v53 = vpop.f32.mrb[33].mxu1 }
 0xd66   : > { %v1778_v54 = vpop.f32.mrb[34].mxu1 }
 0xd67   : > { %v2803_v55 = vpop.f32.mrb[35].mxu1 }
 0xd6c   : > { %v1890_v58 = vpop.f32.mrb[36].mxu1 }
 0xd6d   : > { %1897 = vrot.lane.b32.xlu1 %v1890_v58, %s3753_s0  ;;  %v2814_v59 = vpop.f32.mrb[37].mxu1 }
 0xd6e   : > { %v1893_v60 = vpop.f32.mrb[38].mxu1 }
 0xd6f   : > { %v2815_v61 = vpop.f32.mrb[39].mxu1 }
 0xd74   : > { %v2005_v62 = vpop.f32.mrb[40].mxu1 }
 0xd75   : > { %2012 = vrot.lane.b32.xlu0 %v2005_v62, %s3754_s9  ;;  %v2826_v63 = vpop.f32.mrb[41].mxu1 }
 0xd76   : > { %v2008_v1 = vpop.f32.mrb[42].mxu1 }
 0xd77   : > { %v2827_v2 = vpop.f32.mrb[43].mxu1 }
 0xdd7   : > { %v1783_v4 = vpop.permute.xlu0 %1782 }
 0xdd8   : > { %1785 = vst.msk [vmem:[#allocation2] sm:$0xff] %vm1105_vm5, %v1783_v4 }
 0xddf   : > { %v1898_v5 = vpop.permute.xlu1 %1897 }
 0xde0   : > { %1900 = vst.msk [vmem:[#allocation2] sm:$0xff] %vm1222_vm6, %v1898_v5 }
 0xde7   : > { %v2013_v6 = vpop.permute.xlu0 %2012 }
 0xde8   : > { %2015 = vst.msk [vmem:[#allocation2] sm:$0xff] %vm1339_vm7, %v2013_v6 }
 0xdef   : > { %v2016_v3 = vld [vmem:[#allocation2] sm:$0xff] }
 0xdf0   : > { %v2017_v8 = vpack.c.bf16 %v2016_v3, %v2016_v3  ;;  %v2639_v3 = vld [vmem:[#allocation27] ss:$0 sm:$0xff] }
 0xdf2   : > { %2833 = vmatmul.mubr.msk.bf16.vlgmr.msra.gmra.mrb[36].mxu0 %vm823_vm1, %v2017_v8 }
 0xdf3   : > { %2852 = vmatprep.mubr.msk.bf16.mxu0 %vm3740_vm0, %v3739_v0 }
 0xec5   : > { %v2071_v9 = vpop.f32.mrb[36].mxu0 }
 0xec6   : > { %v2077_v10 = vadd.f32 %v2071_v9, %v4461_v23  ;;  %v2834_v11 = vpop.f32.mrb[37].mxu0  ;;  %v3088_v23 = vld [vmem:[#allocation24] sm:$0xff]  }
 0xec7   : > { %v2074_v12 = vpop.f32.mrb[38].mxu0  ;;  %2845 = vmatpush3.bf16.msra.mxu0 %v3088_v23  ;;  %v2640_v9 = vld [vmem:[#allocation29] ss:$0 sm:$0xff] }
 0xec8   : > { %v2835_v13 = vpop.f32.mrb[39].mxu0  ;;  %v2080_v14 = vsel %vm823_vm1, %v2077_v10, 0.0  ;;  %2846 = vmatprep.subr.bf16.mxu0 %v3739_v0 }
 0xec9   : > { %2081 = vadd.xlane.f32.xlu1 %v2080_v14 }
 0xecb   : > { %2847 = vmatpush3.bf16.msra.mxu0 %v3089_v21 }
 0xecc   : > { %2848 = vmatprep.subr.bf16.mxu0 %v3739_v0 }
 0xecf   : > { %2849 = vmatpush3.bf16.msra.mxu0 %v3090_v26 }
 0xed0   : > { %2850 = vmatprep.subr.bf16.mxu0 %v3739_v0 }
 0xed3   : > { %2851 = vmatpush3.bf16.msra.mxu0 %v3091_v39 }
 0xf56   : > { %v2082_v15 = vpop.xlane.xlu1 %2081 }
 0xf57   : > { %v2083_v16 = vmul.f32 0.03125, %v2082_v15 }
 0xf59   : > { %v2084_v17 = vsub.f32 %v2077_v10, %v2083_v16 }
 0xf5b   : > { %v2085_v18 = vmul.f32 %v2084_v17, %v2084_v17 }
 0xf5d   : > { %v2086_v19 = vsel %vm823_vm1, %v2085_v18, 0.0 }
 0xf5e   : > { %2087 = vadd.xlane.f32.xlu0 %v2086_v19 }
 0xfeb   : > { %v2088_v22 = vpop.xlane.xlu0 %2087 }
 0xfec   : > { %v2089_v24 = vmul.f32 0.032258064, %v2088_v22 }
 0xfee   : > { %3128 = vrsqrt.f32 %v2089_v24  ;;  %vm2092_vm10 = vcmp.eq.f32.partialorder %v2089_v24, inf  ;;  %v2095_v28 = vand.u32 2147483648, %v2089_v24  ;;  %vm2094_vm11 = vcmp.eq.f32.partialorder %v2089_v24, 0.0 }
 0xff8   : > { %v3129_v25 = vpop.eup %3128 }
 0xff9   : > { %v2091_v27 = vmul.f32 %v3129_v25, %v2089_v24 }
 0xffb   : > { %v2093_v29 = vsel %vm2092_vm10, %v2089_v24, %v2091_v27 }
 0xffc   : > { %v2096_v30 = vsel %vm2094_vm11, %v2095_v28, %v2093_v29 }
 0xffd   : > { %v2097_v31 = vadd.f32 1e-06, %v2096_v30 }
 0xfff   : > { %3130 = vrcp.f32 %v2097_v31 }
0x1009   : > { %v3131_v32 = vpop.eup %3130 }
0x100a   : > { %v2099_v34 = vmul.f32 %v3131_v32, %v2084_v17 }
0x100c   : > { %v2106_v36 = vmul.f32 %v2627_v33, %v2099_v34 }
0x100e   : > { %v2113_v37 = vadd.f32 %v2628_v35, %v2106_v36 }
0x1010   : > { %v2114_v38 = vpack.c.bf16 %v2113_v37, %v2113_v37 }
0x1012   : > { %2841 = vmatmul.mubr.msk.bf16.vlgmr.msra.gmra.mrb[44].mxu1 %vm823_vm1, %v2114_v38 }
0x10e5   : > { %v2175_v41 = vpop.f32.mrb[44].mxu1 }
0x10e6   : > { %v2176_v42 = vadd.f32 %v2629_v40, %v2175_v41  ;;  %v2842_v43 = vpop.f32.mrb[45].mxu1 }
0x10e7   : > { %v2178_v44 = vpop.f32.mrb[46].mxu1 }
0x10e8   : > { %v2181_v45 = vmax.f32 %v2176_v42, 0.0  ;;  %v2843_v46 = vpop.f32.mrb[47].mxu1 }
0x10ea   : > { %v2182_v47 = vpack.c.bf16 %v2181_v45, %v2181_v45 }
0x10ec   : > { %2853 = vmatmul.mubr.msk.bf16.vlgmr.msra.gmra.mrb[40].mxu0 %vm2222_vm12, %v2182_v47 }
0x11bf   : > { %v2260_v49 = vpop.f32.mrb[40].mxu0 }
0x11c0   : > { %v2261_v50 = vadd.f32 %v2633_v48, %v2260_v49  ;;  %v2854_v51 = vpop.f32.mrb[41].mxu0 }
0x11c1   : > { %v2263_v52 = vpop.f32.mrb[42].mxu0 }
0x11c2   : > { %v2855_v53 = vpop.f32.mrb[43].mxu0  ;;  %v2266_v54 = vadd.f32 %v2261_v50, %v2113_v37 }
0x11c4   : > { %v2269_v0 = vsel %vm823_vm1, %v2266_v54, 0.0 }
0x11c5   : > { %2270 = vadd.xlane.f32.xlu0 %v2269_v0 }
0x1252   : > { %v2271_v55 = vpop.xlane.xlu0 %2270 }
0x1253   : > { %v2272_v56 = vmul.f32 0.03125, %v2271_v55 }
0x1255   : > { %v2273_v57 = vsub.f32 %v2266_v54, %v2272_v56 }
0x1257   : > { %v2274_v58 = vmul.f32 %v2273_v57, %v2273_v57 }
0x1259   : > { %v2275_v59 = vsel %vm823_vm1, %v2274_v58, 0.0 }
0x125a   : > { %2276 = vadd.xlane.f32.xlu1 %v2275_v59 }
0x12e7   : > { %v2277_v60 = vpop.xlane.xlu1 %2276 }
0x12e8   : > { %v2278_v61 = vmul.f32 0.032258064, %v2277_v60 }
0x12ea   : > { %3132 = vrsqrt.f32 %v2278_v61  ;;  %vm2281_vm13 = vcmp.eq.f32.partialorder %v2278_v61, inf  ;;  %v2284_v1 = vand.u32 2147483648, %v2278_v61  ;;  %vm2283_vm14 = vcmp.eq.f32.partialorder %v2278_v61, 0.0 }
0x12f4   : > { %v3133_v62 = vpop.eup %3132 }
0x12f5   : > { %v2280_v63 = vmul.f32 %v3133_v62, %v2278_v61 }
0x12f7   : > { %v2282_v2 = vsel %vm2281_vm13, %v2278_v61, %v2280_v63 }
0x12f8   : > { %v2285_v4 = vsel %vm2283_vm14, %v2284_v1, %v2282_v2 }
0x12f9   : > { %v2286_v5 = vadd.f32 1e-06, %v2285_v4 }
0x12fb   : > { %3134 = vrcp.f32 %v2286_v5 }
0x1305   : > { %v3135_v6 = vpop.eup %3134 }
0x1306   : > { %v2288_v8 = vmul.f32 %v3135_v6, %v2273_v57 }
0x1308   : > { %v2295_v10 = vmul.f32 %v2639_v3, %v2288_v8 }
0x130a   : > { %v2302_v11 = vadd.f32 %v2640_v9, %v2295_v10 }
0x130c   : > { %2303 = vst.msk [vmem:[%s801_s23] sm:$0xff] %vm823_vm1, %v2302_v11 }
0x130d   : > { %3629 = shalt.err (!%p3626_p10)
}
0x130e   : > { %s3630_s7 = scalar_lea.hbm %s4563_s20, 128  ;;  %s3634_s3 = scalar_lea.hbm %s4708_s19, 256 }
0x130f   : > { %p3631_p5 = scmp.ne.s32.totalorder %s4563_s20, %s3630_s7  ;;  %p3635_p7 = scmp.lt.u32.totalorder %s4563_s20, %s4708_s19 }
0x1310   : > { %p3636_p11 = scmp.lt.u32.totalorder %s3634_s3, %s3630_s7  ;;  %p3638_p4 = scmp.lt.u32.totalorder %s3630_s7, %s4563_s20 }
0x1311   : > { %p3632_p9 = pnand %p3631_p5, %p4709_p12 }
0x1312   : > { %p3637_p8 = por %p3636_p11, %p3635_p7 }
0x1313   : > { %p3633_p3 = pneg %p3632_p9 }
0x1314   : > { %p3639_p1 = por %p3638_p4, %p3637_p8 }
0x1316   : > { %p3640_p13 = pnand %p3639_p1, %p3633_p3 }
0x1318   : > { %3643 = shalt.err (!%p3640_p13)
}
0x1319   : > { %2920 = dma.vmem_to_hbm [thread:$0]  (%p4709_p12), %s4565_s6, 128, %s4563_s20, %s2305_s26  }
0x131a PF: > { %s4710_s21 = sld [smem:[#allocation42_spill]]  ;;  %s4711_s23 = sld [smem:[#allocation45_spill]] }
0x131b   : > { %p4712_p0 = scmp.ne.s32.totalorder %s4683_s17, 0 }
0x1320   : > { %s2330_s28 = sand.u32 1, %s4710_s21   ;;  %p4713_p2 = scmp.ge.s32.totalorder %s4711_s23, 2 }
0x1321   : > { %s2331_s8 = scalar_lea.sflag [#allocation5], %s2330_s28 }
0x1322   : > { %p2976_p6 = pnand %p4713_p2, %p4712_p0 }
0x1324   : > { %3701 = dma.done.wait (!%p2976_p6), %s2331_s8, 128  }
0x1325   : > { %3703 = vsyncadd (!%p2976_p6), %s2331_s8, 4294967168  ;;  %s4714_s24 = sld [smem:[#allocation43_spill]]  ;;  %s4715_s25 = sld [smem:[#allocation44_spill]] }
0x1326   : > { %p40_p10 = scmp.ge.s32.totalorder %s4206_s27, 4   ;;  %s4716_s26 = smov %s4218_s30 }
0x1328   :  { %42 = sbr.rel (!%p40_p10) target bundleno = 26 (0x1a), region = 206 }
0x132f   :  { %2336 = vsyncpa [#allocation4], 1 }
0x1330   :  { %2338 = vsyncpa [#allocation4 + $0x1], 1 }
0x1331   :  { %2339 = vsyncpa [#allocation7], 1 }
0x1332   :  { %2341 = vsyncpa [#allocation7 + $0x1], 1 }
0x1333   :  { %2342 = vsyncpa [#allocation10], 1 }
0x1334   :  { %2343 = vsyncpa [#allocation13], 1 }
0x1335   :  { %2344 = vsyncpa [#allocation16], 1 }
0x1336   :  { %2345 = vsyncpa [#allocation19], 1 }
0x1337   :  { %2346 = vsyncpa [#allocation22], 1 }
0x1338   :  { %2347 = vsyncpa [#allocation25], 1 }
0x1339   :  { %2348 = vsyncpa [#allocation28], 1 }
0x133a   :  { %2349 = vsyncpa [#allocation5], 1 }
0x133b   :  { %2351 = vsyncpa [#allocation5 + $0x1], 1 }

</bundles_post_ra>
